<compile_context>
chip_gen: v7x
topology: tpu7x:2x2x1
jax: 0.10.0
libtpu: 0.0.40
codegen_flags: <defaults>
</compile_context>

<pallas_src>
import functools
import math

import jax
import jax.numpy as jnp
import numpy as np
from jax import lax
from jax.experimental import pallas as pl
from jax.experimental.pallas import tpu as pltpu


def _c128(v):
    return ((v + 127) // 128) * 128


def _mamba_kernel(x_ref, win_ref, convw_ref, convb_ref, wx_ref, wdt_ref,
                  at_ref, dvec_ref, wout_ref, out_ref,
                  state_ref, xpad_ref, dl_ref, du_ref, b_ref, c_ref, ys_ref,
                  *, et):
    j = pl.program_id(1)                      # sequence-chunk index (in order)
    Lc = x_ref.shape[1]                       # chunk length
    E = at_ref.shape[1]                       # d_inner
    Ep = win_ref.shape[1] // 2                # lane-padded d_inner segment
    K = convw_ref.shape[0]                    # d_conv
    N = at_ref.shape[0]                       # d_state
    R = wdt_ref.shape[0]                      # dt_rank
    r128, n128 = _c128(R), _c128(N)
    f32 = jnp.float32
    bf16 = jnp.bfloat16
    PAD = 8                                   # 8-aligned lookback region
    TB = 8                                    # scan time-block

    # -- reset per-sequence carried state at the first chunk of each batch ---
    @pl.when(j == 0)
    def _():
        state_ref[...] = jnp.zeros_like(state_ref)
        xpad_ref[0:PAD, :] = jnp.zeros((PAD, E), f32)

    # -- fused input projection (left | right), bf16 operands / f32 acc ------
    x = x_ref[0]                                                     # (Lc, D) bf16
    xz = jnp.dot(x, win_ref[...], preferred_element_type=f32)       # (Lc, 2*Ep)
    xin = xz[:, 0:E]                                                 # (Lc, E)
    res = xz[:, Ep:Ep + E]                                           # (Lc, E)

    # -- depthwise causal conv1d; lookback rows carried across chunks --------
    xpad_ref[PAD:PAD + Lc, :] = xin                                  # aligned store
    acc = jnp.broadcast_to(convb_ref[...], (Lc, E))
    base = PAD - (K - 1)
    for k in range(K):                                               # K static, small
        acc = acc + xpad_ref[base + k:base + k + Lc, :] * convw_ref[k:k + 1, :]
    u = jax.nn.silu(acc)                                             # (Lc, E) f32
    # stash last K-1 rows of xin for the next chunk of this sequence
    xpad_ref[PAD - (K - 1):PAD, :] = xin[Lc - (K - 1):, :]

    # -- fused x_proj (dt | B | C, 128-aligned segments) + dt_proj + softplus
    u_bf = u.astype(bf16)
    xdbl = jnp.dot(u_bf, wx_ref[...], preferred_element_type=f32)    # (Lc, Wp)
    dlo = xdbl[:, 0:R]                                               # (Lc, R)
    b_ref[...] = xdbl[:, r128:r128 + N]                              # (Lc, N)
    c_ref[...] = xdbl[:, r128 + n128:r128 + n128 + N]                # (Lc, N)
    delta = jax.nn.softplus(
        jnp.dot(dlo.astype(bf16), wdt_ref[...], preferred_element_type=f32))
    dl_ref[...] = delta
    du_ref[...] = delta * u

    # -- fused selective scan --------------------------------------------------
    # State is a fori_loop carry (vregs) per d_inner lane tile; state_ref is
    # read/written once per chunk per tile.  Per 8-step block: aligned loads,
    # off-chain exp / outer-product precompute, serial FMA chain, aligned store.
    nblk = Lc // TB
    n_tiles = E // et
    for ti in range(n_tiles):
        e0 = ti * et
        a_t = at_ref[:, e0:e0 + et]                                   # (N, et)

        def blk_step(blk, st):
            t0 = pl.multiple_of(blk * TB, TB)
            d_blk = dl_ref[pl.ds(t0, TB), e0:e0 + et]                 # (TB, et)
            du_blk = du_ref[pl.ds(t0, TB), e0:e0 + et]                # (TB, et)
            bT = b_ref[pl.ds(t0, TB), :].T                            # (N, TB)
            cT = c_ref[pl.ds(t0, TB), :].T                            # (N, TB)
            # block precompute, independent of the carried state:
            dA = [jnp.exp(d_blk[s:s + 1, :] * a_t) for s in range(TB)]      # (N, et)
            dBu = [bT[:, s:s + 1] * du_blk[s:s + 1, :] for s in range(TB)]  # (N, et)
            ys = []
            for s in range(TB):                                       # serial chain
                st = dA[s] * st + dBu[s]
                ys.append(jnp.sum(st * cT[:, s:s + 1], axis=0, keepdims=True))
            ys_ref[pl.ds(t0, TB), e0:e0 + et] = jnp.concatenate(ys, axis=0)
            return st

        st_fin = lax.fori_loop(0, nblk, blk_step, state_ref[:, e0:e0 + et])
        state_ref[:, e0:e0 + et] = st_fin

    # -- skip connection, gate, output projection (lane-dense output) --------
    y = ys_ref[...] + u * dvec_ref[...]
    y = y * jax.nn.silu(res)
    out = jnp.dot(y.astype(bf16), wout_ref[...], preferred_element_type=f32)
    out_ref[0] = out.astype(out_ref.dtype)


def mamba_block_pallas(x, params, *, chunk=None, scan_lane_tile=512,
                       vmem_limit_bytes=48 * 1024 * 1024,
                       single_buffer_weights=False):
    """x: (batch, seq_len, d_model); params from prepare_params().

    chunk: sequence tile; on v5e/v6e use 512-1024 with vmem_limit ~100 MiB,
    keep smaller on v7x (64 MiB VMEM).  single_buffer_weights=True requests
    pl.Buffered(1) on the constant weight inputs (v7x VMEM relief)."""
    (win, convw_t, convb, wx_all, wdt, a_t, dvec, wout_p) = params
    b, L, d_model = x.shape
    out_dtype = x.dtype
    E = a_t.shape[1]
    K = convw_t.shape[0]
    N = a_t.shape[0]
    R = wdt.shape[0]
    Wp = wx_all.shape[1]
    Dp = wout_p.shape[1]

    Lc = L if chunk is None else min(chunk, L)
    assert L % Lc == 0, "chunk must divide seq_len"
    assert Lc % 8 == 0, "chunk must be a multiple of 8"
    assert K - 1 <= 8, "d_conv-1 must fit the 8-row lookback region"
    ET = min(E, scan_lane_tile)
    assert E % ET == 0, "d_inner must be divisible by the scan lane tile"
    nchunks = L // Lc

    x = x.astype(jnp.bfloat16)

    def wspec(shape):
        imap = lambda i, j, s=shape: (0,) * len(s)
        if single_buffer_weights:
            return pl.BlockSpec(shape, imap, pipeline_mode=pl.Buffered(1))
        return pl.BlockSpec(shape, imap)

    out = pl.pallas_call(
        functools.partial(_mamba_kernel, et=ET),
        out_shape=jax.ShapeDtypeStruct((b, L, Dp), out_dtype),
        grid_spec=pltpu.PrefetchScalarGridSpec(
            num_scalar_prefetch=0,
            grid=(b, nchunks),
            in_specs=[
                pl.BlockSpec((1, Lc, d_model), lambda i, j: (i, j, 0)),  # x chunk
                wspec(win.shape),       # fused in_projection (d_model, 2*Ep) bf16
                wspec((K, E)),          # conv weight (K, E)                f32
                wspec((1, E)),          # conv bias                         f32
                wspec((E, Wp)),         # fused x_proj (dt|B|C, padded)     bf16
                wspec((R, E)),          # dt_proj^T                         bf16
                wspec((N, E)),          # A^T = (-exp(A_log))^T             f32
                wspec((1, E)),          # D                                 f32
                wspec((E, Dp)),         # out_proj^T (lane-dense)           bf16
            ],
            out_specs=pl.BlockSpec((1, Lc, Dp), lambda i, j: (i, j, 0)),
            scratch_shapes=[
                pltpu.VMEM((N, E), jnp.float32),            # SSM state (carried)
                pltpu.VMEM((Lc + 8, E), jnp.float32),       # conv window (carried)
                pltpu.VMEM((Lc, E), jnp.float32),           # delta
                pltpu.VMEM((Lc, E), jnp.float32),           # delta * u
                pltpu.VMEM((Lc, N), jnp.float32),           # B
                pltpu.VMEM((Lc, N), jnp.float32),           # C
                pltpu.VMEM((Lc, E), jnp.float32),           # scan outputs
            ],
        ),
        compiler_params=pltpu.CompilerParams(
            # Chunk axis MUST remain "arbitrary": the SSM state / conv lookback
            # are carried across chunks of the same batch row.
            dimension_semantics=("parallel", "arbitrary"),
            vmem_limit_bytes=vmem_limit_bytes,
        ),
    )(x, win, convw_t, convb, wx_all, wdt, a_t, dvec, wout_p)
    if Dp != d_model:
        out = out[..., :d_model]
    return out


def prepare_params(raw_params, lane=128):
    """Transform PyTorch-layout parameters into the kernel's fused layout."""
    (W_l, W_r, conv_w, conv_b, W_x, W_dt, A_log, D, W_out) = raw_params
    E, K = conv_w.shape
    N = A_log.shape[1]
    R = W_dt.shape[1]
    d_model = W_out.shape[0]
    bf16, f32 = jnp.bfloat16, jnp.float32
    ceil_to = lambda v, m: ((v + m - 1) // m) * m

    # fused input projection: [left | right], each segment 128-lane aligned
    Ep = ceil_to(E, lane)
    win = jnp.zeros((d_model, 2 * Ep), f32)
    win = win.at[:, 0:E].set(W_l.T)
    win = win.at[:, Ep:Ep + E].set(W_r.T)
    win = win.astype(bf16)

    convw_t = conv_w.T.astype(f32)                   # (K, E)
    convb = conv_b.reshape(1, E).astype(f32)         # (1, E)

    # fused x_proj: [dt | B | C], each segment 128-lane aligned
    r128, n128 = ceil_to(R, lane), ceil_to(N, lane)
    Wp = r128 + 2 * n128
    wx_all = jnp.zeros((E, Wp), f32)
    wx_all = wx_all.at[:, 0:R].set(W_x[:R, :].T)
    wx_all = wx_all.at[:, r128:r128 + N].set(W_x[R:R + N, :].T)
    wx_all = wx_all.at[:, r128 + n128:r128 + n128 + N].set(W_x[R + N:, :].T)
    wx_all = wx_all.astype(bf16)

    wdt = W_dt.T.astype(bf16)                        # (R, E)
    a_t = (-jnp.exp(A_log.astype(f32))).T            # (N, E)
    dvec = D.reshape(1, E).astype(f32)               # (1, E)

    if d_model % lane == 0:                          # skip padding when lane-dense
        wout_p = W_out.T.astype(bf16)
    else:
        dp = ceil_to(d_model, lane)
        wout_p = jnp.zeros((E, dp), f32).at[:, :d_model].set(W_out.T).astype(bf16)
    return (win, convw_t, convb, wx_all, wdt, a_t, dvec, wout_p)


def mamba_block_reference(x, raw_params):
    """Pure-JAX mirror of MambaBlock.forward (bf16 matmul operands, f32
    accumulation — matching the kernel) for validation."""
    (W_l, W_r, conv_w, conv_b, W_x, W_dt, A_log, D, W_out) = raw_params
    b, L, _ = x.shape
    E, K = conv_w.shape
    N = A_log.shape[1]
    R = W_dt.shape[1]
    f32, bf16 = jnp.float32, jnp.bfloat16
    dot = lambda a, w: jnp.dot(a.astype(bf16), w.astype(bf16),
                               preferred_element_type=f32)

    res = dot(x, W_r.T)                                    # (b, L, E)
    xin = dot(x, W_l.T)                                    # (b, L, E)

    xp = jnp.pad(xin, ((0, 0), (K - 1, 0), (0, 0)))
    conv = conv_b.reshape(1, 1, E).astype(f32)
    for k in range(K):
        conv = conv + xp[:, k:k + L, :] * conv_w[:, k].reshape(1, 1, E)
    u = jax.nn.silu(conv)                                  # (b, L, E)

    dlo = dot(u, W_x[:R, :].T)                             # (b, L, R)
    Bm = dot(u, W_x[R:R + N, :].T)                         # (b, L, N)
    Cm = dot(u, W_x[R + N:, :].T)                          # (b, L, N)
    delta = jax.nn.softplus(dot(dlo, W_dt.T))              # (b, L, E)

    A = -jnp.exp(A_log.astype(f32))                        # (E, N)
    dA = jnp.exp(delta[..., None] * A[None, None, :, :])   # (b, L, E, N)
    dBu = delta[..., None] * Bm[:, :, None, :] * u[..., None]

    def step(state, inp):
        dA_t, dBu_t, C_t = inp
        state = dA_t * state + dBu_t
        y = jnp.einsum('ben,bn->be', state, C_t)
        return state, y

    state0 = jnp.zeros((b, E, N), f32)
    _, ys = lax.scan(step, state0,
                     (jnp.moveaxis(dA, 1, 0),
                      jnp.moveaxis(dBu, 1, 0),
                      jnp.moveaxis(Cm, 1, 0)))
    ys = jnp.moveaxis(ys, 0, 1)                            # (b, L, E)
    y = ys + u * D.reshape(1, 1, E)
    y = y * jax.nn.silu(res)
    return dot(y, W_out.T)                                 # (b, L, d_model)


def make_raw_params(key, d_model, d_inner, d_state, dt_rank, d_conv):
    """PyTorch-layout parameters (nn.Linear weights are (out, in))."""
    ks = jax.random.split(key, 7)
    s = lambda fan_in: 1.0 / math.sqrt(fan_in)
    W_l = jax.random.normal(ks[0], (d_inner, d_model), jnp.float32) * s(d_model)
    W_r = jax.random.normal(ks[1], (d_inner, d_model), jnp.float32) * s(d_model)
    conv_w = jax.random.normal(ks[2], (d_inner, d_conv), jnp.float32) * s(d_conv)
    conv_b = jax.random.normal(ks[3], (d_inner,), jnp.float32) * 0.1
    W_x = jax.random.normal(ks[4], (dt_rank + 2 * d_state, d_inner), jnp.float32) * s(d_inner)
    W_dt = jax.random.normal(ks[5], (d_inner, dt_rank), jnp.float32) * s(dt_rank)
    A_log = jnp.log(jnp.broadcast_to(
        jnp.arange(1, d_state + 1, dtype=jnp.float32)[None, :], (d_inner, d_state)))
    D = jnp.ones((d_inner,), jnp.float32)
    W_out = jax.random.normal(ks[6], (d_model, d_inner), jnp.float32) * s(d_inner)
    return (W_l, W_r, conv_w, conv_b, W_x, W_dt, A_log, D, W_out)


if __name__ == "__main__":
    # small shapes consistent with the module; 2 chunks exercise the carry path
    batch, seq_len = 2, 16
    d_model, d_inner, d_state, d_conv = 32, 64, 16, 4
    dt_rank = math.ceil(d_model / 16)     # 'auto' -> 2

    key = jax.random.PRNGKey(0)
    kx, kp = jax.random.split(key)
    x = jax.random.normal(kx, (batch, seq_len, d_model), jnp.float32)
    raw = make_raw_params(kp, d_model, d_inner, d_state, dt_rank, d_conv)
    params = prepare_params(raw)

    out = jax.block_until_ready(mamba_block_pallas(x, params, chunk=8))
    ref = jax.block_until_ready(mamba_block_reference(x, raw))
    np.testing.assert_allclose(np.asarray(out), np.asarray(ref),
                               rtol=2e-3, atol=2e-3)
    # TODO(synk): one-off check against a pure-f32 reference (looser tolerance)
    # to bound the systematic bf16-matmul error vs. the PyTorch f32 module.
    print("KERNEL_OK")
</pallas_src>

<mosaic_0001>
module attributes {stable_mosaic.version = 11 : i64} {
  func.func @_mamba_kernel(%arg0: i32, %arg1: i32, %arg2: memref<1x8x32xbf16, #tpu.memory_space<vmem>>, %arg3: memref<32x256xbf16, #tpu.memory_space<vmem>>, %arg4: memref<4x64xf32, #tpu.memory_space<vmem>>, %arg5: memref<1x64xf32, #tpu.memory_space<vmem>>, %arg6: memref<64x384xbf16, #tpu.memory_space<vmem>>, %arg7: memref<2x64xbf16, #tpu.memory_space<vmem>>, %arg8: memref<16x64xf32, #tpu.memory_space<vmem>>, %arg9: memref<1x64xf32, #tpu.memory_space<vmem>>, %arg10: memref<64x128xbf16, #tpu.memory_space<vmem>>, %arg11: memref<1x8x128xf32, #tpu.memory_space<vmem>>, %arg12: memref<16x64xf32, #tpu.memory_space<vmem>>, %arg13: memref<16x64xf32, #tpu.memory_space<vmem>>, %arg14: memref<8x64xf32, #tpu.memory_space<vmem>>, %arg15: memref<8x64xf32, #tpu.memory_space<vmem>>, %arg16: memref<8x16xf32, #tpu.memory_space<vmem>>, %arg17: memref<8x16xf32, #tpu.memory_space<vmem>>, %arg18: memref<8x64xf32, #tpu.memory_space<vmem>>) attributes {dimension_semantics = [#tpu.dimension_semantics<parallel>, #tpu.dimension_semantics<arbitrary>], iteration_bounds = array<i64: 2, 2>, scalar_prefetch = 0 : i64, scratch_operands = 7 : i64, tpu.core_type = #tpu.core_type<tc>, window_params = [{transform_indices = @transform_0, window_bounds = array<i64: 1, 8, 32>}, {pipeline_mode = #tpu.pipeline_mode<synchronous>, transform_indices = @transform_1, window_bounds = array<i64: 32, 256>}, {pipeline_mode = #tpu.pipeline_mode<synchronous>, transform_indices = @transform_2, window_bounds = array<i64: 4, 64>}, {pipeline_mode = #tpu.pipeline_mode<synchronous>, transform_indices = @transform_3, window_bounds = array<i64: 1, 64>}, {pipeline_mode = #tpu.pipeline_mode<synchronous>, transform_indices = @transform_4, window_bounds = array<i64: 64, 384>}, {pipeline_mode = #tpu.pipeline_mode<synchronous>, transform_indices = @transform_5, window_bounds = array<i64: 2, 64>}, {pipeline_mode = #tpu.pipeline_mode<synchronous>, transform_indices = @transform_6, window_bounds = array<i64: 16, 64>}, {pipeline_mode = #tpu.pipeline_mode<synchronous>, transform_indices = @transform_7, window_bounds = array<i64: 1, 64>}, {pipeline_mode = #tpu.pipeline_mode<synchronous>, transform_indices = @transform_8, window_bounds = array<i64: 64, 128>}, {transform_indices = @transform_9, window_bounds = array<i64: 1, 8, 128>}]} {
    %c0_i32 = arith.constant 0 : i32
    %0 = arith.cmpi eq, %arg1, %c0_i32 : i32
    %1 = arith.extui %0 : i1 to i32
    %c0_i32_0 = arith.constant 0 : i32
    %2 = arith.cmpi ne, %1, %c0_i32_0 : i32
    scf.if %2 {
      %cst_68 = arith.constant 0.000000e+00 : f32
      %233 = vector.broadcast %cst_68 : f32 to vector<16x64xf32>
      %c0_69 = arith.constant 0 : index
      %c0_70 = arith.constant 0 : index
      %234 = vector.load %arg12[%c0_69, %c0_70] : memref<16x64xf32, #tpu.memory_space<vmem>>, vector<16x64xf32>
      tpu.vector_store %arg12[%c0_69, %c0_70], %233 {strides = array<i32>} : memref<16x64xf32, #tpu.memory_space<vmem>>, vector<16x64xf32>,
      %cst_71 = arith.constant 0.000000e+00 : f32
      %235 = vector.broadcast %cst_71 : f32 to vector<8x64xf32>
      %c0_72 = arith.constant 0 : index
      %c0_73 = arith.constant 0 : index
      %236 = vector.load %arg13[%c0_72, %c0_73] : memref<16x64xf32, #tpu.memory_space<vmem>>, vector<8x64xf32>
      tpu.vector_store %arg13[%c0_72, %c0_73], %235 {strides = array<i32>} : memref<16x64xf32, #tpu.memory_space<vmem>>, vector<8x64xf32>,
    } else {
    }
    %c0 = arith.constant 0 : index
    %c0_1 = arith.constant 0 : index
    %c0_2 = arith.constant 0 : index
    %3 = vector.load %arg2[%c0, %c0_1, %c0_2] : memref<1x8x32xbf16, #tpu.memory_space<vmem>>, vector<1x8x32xbf16>
    %4 = vector.shape_cast %3 : vector<1x8x32xbf16> to vector<8x32xbf16>
    %c0_3 = arith.constant 0 : index
    %c0_4 = arith.constant 0 : index
    %5 = vector.load %arg3[%c0_3, %c0_4] : memref<32x256xbf16, #tpu.memory_space<vmem>>, vector<32x256xbf16>
    %cst = arith.constant dense<0.000000e+00> : vector<8x256xf32>
    %6 = tpu.matmul %4, %5, %cst {dimension_numbers = #tpu.dot_dimension_numbers<[1], [0], [0], [1], [0, 0, 1, 1], [], []>} : vector<8x32xbf16>, vector<32x256xbf16>, vector<8x256xf32> -> vector<8x256xf32>
    %7 = vector.extract_strided_slice %6 {offsets = [0, 0], sizes = [8, 64], strides = [1, 1]} : vector<8x256xf32> to vector<8x64xf32>
    %8 = vector.extract_strided_slice %6 {offsets = [0, 128], sizes = [8, 64], strides = [1, 1]} : vector<8x256xf32> to vector<8x64xf32>
    %c8 = arith.constant 8 : index
    %c0_5 = arith.constant 0 : index
    %9 = vector.load %arg13[%c8, %c0_5] : memref<16x64xf32, #tpu.memory_space<vmem>>, vector<8x64xf32>
    tpu.vector_store %arg13[%c8, %c0_5], %7 {strides = array<i32>} : memref<16x64xf32, #tpu.memory_space<vmem>>, vector<8x64xf32>,
    %c0_6 = arith.constant 0 : index
    %c0_7 = arith.constant 0 : index
    %10 = vector.load %arg5[%c0_6, %c0_7] : memref<1x64xf32, #tpu.memory_space<vmem>>, vector<1x64xf32>
    %11 = vector.shape_cast %10 : vector<1x64xf32> to vector<1x64xf32>
    %12 = vector.broadcast %11 : vector<1x64xf32> to vector<8x64xf32>
    %c5 = arith.constant 5 : index
    %c0_8 = arith.constant 0 : index
    %13 = vector.load %arg13[%c5, %c0_8] : memref<16x64xf32, #tpu.memory_space<vmem>>, vector<8x64xf32>
    %c0_9 = arith.constant 0 : index
    %c0_10 = arith.constant 0 : index
    %14 = vector.load %arg4[%c0_9, %c0_10] : memref<4x64xf32, #tpu.memory_space<vmem>>, vector<1x64xf32>
    %15 = vector.broadcast %14 : vector<1x64xf32> to vector<8x64xf32>
    %16 = arith.mulf %13, %15 : vector<8x64xf32>
    %17 = arith.addf %12, %16 : vector<8x64xf32>
    %c6 = arith.constant 6 : index
    %c0_11 = arith.constant 0 : index
    %18 = vector.load %arg13[%c6, %c0_11] : memref<16x64xf32, #tpu.memory_space<vmem>>, vector<8x64xf32>
    %c1 = arith.constant 1 : index
    %c0_12 = arith.constant 0 : index
    %19 = vector.load %arg4[%c1, %c0_12] : memref<4x64xf32, #tpu.memory_space<vmem>>, vector<1x64xf32>
    %20 = vector.broadcast %19 : vector<1x64xf32> to vector<8x64xf32>
    %21 = arith.mulf %18, %20 : vector<8x64xf32>
    %22 = arith.addf %17, %21 : vector<8x64xf32>
    %c7 = arith.constant 7 : index
    %c0_13 = arith.constant 0 : index
    %23 = vector.load %arg13[%c7, %c0_13] : memref<16x64xf32, #tpu.memory_space<vmem>>, vector<8x64xf32>
    %c2 = arith.constant 2 : index
    %c0_14 = arith.constant 0 : index
    %24 = vector.load %arg4[%c2, %c0_14] : memref<4x64xf32, #tpu.memory_space<vmem>>, vector<1x64xf32>
    %25 = vector.broadcast %24 : vector<1x64xf32> to vector<8x64xf32>
    %26 = arith.mulf %23, %25 : vector<8x64xf32>
    %27 = arith.addf %22, %26 : vector<8x64xf32>
    %c8_15 = arith.constant 8 : index
    %c0_16 = arith.constant 0 : index
    %28 = vector.load %arg13[%c8_15, %c0_16] : memref<16x64xf32, #tpu.memory_space<vmem>>, vector<8x64xf32>
    %c3 = arith.constant 3 : index
    %c0_17 = arith.constant 0 : index
    %29 = vector.load %arg4[%c3, %c0_17] : memref<4x64xf32, #tpu.memory_space<vmem>>, vector<1x64xf32>
    %30 = vector.broadcast %29 : vector<1x64xf32> to vector<8x64xf32>
    %31 = arith.mulf %28, %30 : vector<8x64xf32>
    %32 = arith.addf %27, %31 : vector<8x64xf32>
    %33 = arith.negf %32 : vector<8x64xf32>
    %34 = math.exp %33 : vector<8x64xf32>
    %cst_18 = arith.constant 1.000000e+00 : f32
    %35 = vector.broadcast %cst_18 : f32 to vector<8x64xf32>
    %36 = arith.addf %35, %34 : vector<8x64xf32>
    %37 = arith.divf %35, %36 : vector<8x64xf32>
    %38 = arith.mulf %32, %37 : vector<8x64xf32>
    %39 = vector.extract_strided_slice %7 {offsets = [5, 0], sizes = [3, 64], strides = [1, 1]} : vector<8x64xf32> to vector<3x64xf32>
    %c5_19 = arith.constant 5 : index
    %c0_20 = arith.constant 0 : index
    %40 = vector.load %arg13[%c5_19, %c0_20] : memref<16x64xf32, #tpu.memory_space<vmem>>, vector<3x64xf32>
    tpu.vector_store %arg13[%c5_19, %c0_20], %39 {strides = array<i32>} : memref<16x64xf32, #tpu.memory_space<vmem>>, vector<3x64xf32>,
    %41 = arith.truncf %38 : vector<8x64xf32> to vector<8x64xbf16>
    %c0_21 = arith.constant 0 : index
    %c0_22 = arith.constant 0 : index
    %42 = vector.load %arg6[%c0_21, %c0_22] : memref<64x384xbf16, #tpu.memory_space<vmem>>, vector<64x384xbf16>
    %cst_23 = arith.constant dense<0.000000e+00> : vector<8x384xf32>
    %43 = tpu.matmul %41, %42, %cst_23 {dimension_numbers = #tpu.dot_dimension_numbers<[1], [0], [0], [1], [0, 0, 1, 1], [], []>} : vector<8x64xbf16>, vector<64x384xbf16>, vector<8x384xf32> -> vector<8x384xf32>
    %44 = vector.extract_strided_slice %43 {offsets = [0, 0], sizes = [8, 2], strides = [1, 1]} : vector<8x384xf32> to vector<8x2xf32>
    %45 = vector.extract_strided_slice %43 {offsets = [0, 128], sizes = [8, 16], strides = [1, 1]} : vector<8x384xf32> to vector<8x16xf32>
    %c0_24 = arith.constant 0 : index
    %c0_25 = arith.constant 0 : index
    %46 = vector.load %arg16[%c0_24, %c0_25] : memref<8x16xf32, #tpu.memory_space<vmem>>, vector<8x16xf32>
    tpu.vector_store %arg16[%c0_24, %c0_25], %45 {strides = array<i32>} : memref<8x16xf32, #tpu.memory_space<vmem>>, vector<8x16xf32>,
    %47 = vector.extract_strided_slice %43 {offsets = [0, 256], sizes = [8, 16], strides = [1, 1]} : vector<8x384xf32> to vector<8x16xf32>
    %c0_26 = arith.constant 0 : index
    %c0_27 = arith.constant 0 : index
    %48 = vector.load %arg17[%c0_26, %c0_27] : memref<8x16xf32, #tpu.memory_space<vmem>>, vector<8x16xf32>
    tpu.vector_store %arg17[%c0_26, %c0_27], %47 {strides = array<i32>} : memref<8x16xf32, #tpu.memory_space<vmem>>, vector<8x16xf32>,
    %49 = arith.truncf %44 : vector<8x2xf32> to vector<8x2xbf16>
    %c0_28 = arith.constant 0 : index
    %c0_29 = arith.constant 0 : index
    %50 = vector.load %arg7[%c0_28, %c0_29] : memref<2x64xbf16, #tpu.memory_space<vmem>>, vector<2x64xbf16>
    %cst_30 = arith.constant dense<0.000000e+00> : vector<8x64xf32>
    %51 = tpu.matmul %49, %50, %cst_30 {dimension_numbers = #tpu.dot_dimension_numbers<[1], [0], [0], [1], [0, 0, 1, 1], [], []>} : vector<8x2xbf16>, vector<2x64xbf16>, vector<8x64xf32> -> vector<8x64xf32>
    %cst_31 = arith.constant 0.000000e+00 : f32
    %52 = vector.broadcast %cst_31 : f32 to vector<8x64xf32>
    %53 = arith.maximumf %51, %52 : vector<8x64xf32>
    %54 = vector.broadcast %cst_31 : f32 to vector<8x64xf32>
    %55 = arith.subf %51, %54 : vector<8x64xf32>
    %56 = arith.cmpf one, %55, %55 : vector<8x64xf32>
    %57 = vector.broadcast %cst_31 : f32 to vector<8x64xf32>
    %58 = arith.addf %51, %57 : vector<8x64xf32>
    %59 = math.absf %55 : vector<8x64xf32>
    %cst_32 = arith.constant 0.000000e+00 : f32
    %60 = vector.broadcast %cst_32 : f32 to vector<8x64xf32>
    %61 = arith.subf %60, %59 : vector<8x64xf32>
    %62 = math.exp %61 : vector<8x64xf32>
    %63 = math.log1p %62 : vector<8x64xf32>
    %64 = arith.addf %53, %63 : vector<8x64xf32>
    %65 = arith.select %56, %58, %64 : vector<8x64xi1>, vector<8x64xf32>
    %c0_33 = arith.constant 0 : index
    %c0_34 = arith.constant 0 : index
    %66 = vector.load %arg14[%c0_33, %c0_34] : memref<8x64xf32, #tpu.memory_space<vmem>>, vector<8x64xf32>
    tpu.vector_store %arg14[%c0_33, %c0_34], %65 {strides = array<i32>} : memref<8x64xf32, #tpu.memory_space<vmem>>, vector<8x64xf32>,
    %67 = arith.mulf %65, %38 : vector<8x64xf32>
    %c0_35 = arith.constant 0 : index
    %c0_36 = arith.constant 0 : index
    %68 = vector.load %arg15[%c0_35, %c0_36] : memref<8x64xf32, #tpu.memory_space<vmem>>, vector<8x64xf32>
    tpu.vector_store %arg15[%c0_35, %c0_36], %67 {strides = array<i32>} : memref<8x64xf32, #tpu.memory_space<vmem>>, vector<8x64xf32>,
    %c0_37 = arith.constant 0 : index
    %c0_38 = arith.constant 0 : index
    %69 = vector.load %arg8[%c0_37, %c0_38] : memref<16x64xf32, #tpu.memory_space<vmem>>, vector<16x64xf32>
    %c0_39 = arith.constant 0 : index
    %c0_40 = arith.constant 0 : index
    %70 = vector.load %arg12[%c0_39, %c0_40] : memref<16x64xf32, #tpu.memory_space<vmem>>, vector<16x64xf32>
    %c0_i32_41 = arith.constant 0 : i32
    %c8_i32 = arith.constant 8 : i32
    %71 = arith.muli %c0_i32_41, %c8_i32 : i32
    %72 = tpu.assume_multiple %71, 8 : i32
    %73 = arith.index_cast %72 : i32 to index
    %c0_42 = arith.constant 0 : index
    %74 = vector.load %arg14[%73, %c0_42] : memref<8x64xf32, #tpu.memory_space<vmem>>, vector<8x64xf32>
    %75 = arith.index_cast %72 : i32 to index
    %c0_43 = arith.constant 0 : index
    %76 = vector.load %arg15[%75, %c0_43] : memref<8x64xf32, #tpu.memory_space<vmem>>, vector<8x64xf32>
    %77 = arith.index_cast %72 : i32 to index
    %c0_44 = arith.constant 0 : index
    %78 = vector.load %arg16[%77, %c0_44] : memref<8x16xf32, #tpu.memory_space<vmem>>, vector<8x16xf32>
    %79 = tpu.transpose %78, [1, 0] : vector<8x16xf32> -> vector<16x8xf32>
    %80 = arith.index_cast %72 : i32 to index
    %c0_45 = arith.constant 0 : index
    %81 = vector.load %arg17[%80, %c0_45] : memref<8x16xf32, #tpu.memory_space<vmem>>, vector<8x16xf32>
    %82 = tpu.transpose %81, [1, 0] : vector<8x16xf32> -> vector<16x8xf32>
    %83 = vector.extract_strided_slice %74 {offsets = [0, 0], sizes = [1, 64], strides = [1, 1]} : vector<8x64xf32> to vector<1x64xf32>
    %84 = vector.broadcast %83 : vector<1x64xf32> to vector<16x64xf32>
    %85 = arith.mulf %84, %69 : vector<16x64xf32>
    %86 = math.exp %85 : vector<16x64xf32>
    %87 = vector.extract_strided_slice %74 {offsets = [1, 0], sizes = [1, 64], strides = [1, 1]} : vector<8x64xf32> to vector<1x64xf32>
    %88 = vector.broadcast %87 : vector<1x64xf32> to vector<16x64xf32>
    %89 = arith.mulf %88, %69 : vector<16x64xf32>
    %90 = math.exp %89 : vector<16x64xf32>
    %91 = vector.extract_strided_slice %74 {offsets = [2, 0], sizes = [1, 64], strides = [1, 1]} : vector<8x64xf32> to vector<1x64xf32>
    %92 = vector.broadcast %91 : vector<1x64xf32> to vector<16x64xf32>
    %93 = arith.mulf %92, %69 : vector<16x64xf32>
    %94 = math.exp %93 : vector<16x64xf32>
    %95 = vector.extract_strided_slice %74 {offsets = [3, 0], sizes = [1, 64], strides = [1, 1]} : vector<8x64xf32> to vector<1x64xf32>
    %96 = vector.broadcast %95 : vector<1x64xf32> to vector<16x64xf32>
    %97 = arith.mulf %96, %69 : vector<16x64xf32>
    %98 = math.exp %97 : vector<16x64xf32>
    %99 = vector.extract_strided_slice %74 {offsets = [4, 0], sizes = [1, 64], strides = [1, 1]} : vector<8x64xf32> to vector<1x64xf32>
    %100 = vector.broadcast %99 : vector<1x64xf32> to vector<16x64xf32>
    %101 = arith.mulf %100, %69 : vector<16x64xf32>
    %102 = math.exp %101 : vector<16x64xf32>
    %103 = vector.extract_strided_slice %74 {offsets = [5, 0], sizes = [1, 64], strides = [1, 1]} : vector<8x64xf32> to vector<1x64xf32>
    %104 = vector.broadcast %103 : vector<1x64xf32> to vector<16x64xf32>
    %105 = arith.mulf %104, %69 : vector<16x64xf32>
    %106 = math.exp %105 : vector<16x64xf32>
    %107 = vector.extract_strided_slice %74 {offsets = [6, 0], sizes = [1, 64], strides = [1, 1]} : vector<8x64xf32> to vector<1x64xf32>
    %108 = vector.broadcast %107 : vector<1x64xf32> to vector<16x64xf32>
    %109 = arith.mulf %108, %69 : vector<16x64xf32>
    %110 = math.exp %109 : vector<16x64xf32>
    %111 = vector.extract_strided_slice %74 {offsets = [7, 0], sizes = [1, 64], strides = [1, 1]} : vector<8x64xf32> to vector<1x64xf32>
    %112 = vector.broadcast %111 : vector<1x64xf32> to vector<16x64xf32>
    %113 = arith.mulf %112, %69 : vector<16x64xf32>
    %114 = math.exp %113 : vector<16x64xf32>
    %115 = vector.extract_strided_slice %79 {offsets = [0, 0], sizes = [16, 1], strides = [1, 1]} : vector<16x8xf32> to vector<16x1xf32>
    %116 = vector.extract_strided_slice %76 {offsets = [0, 0], sizes = [1, 64], strides = [1, 1]} : vector<8x64xf32> to vector<1x64xf32>
    %117 = vector.broadcast %115 : vector<16x1xf32> to vector<16x64xf32>
    %118 = vector.broadcast %116 : vector<1x64xf32> to vector<16x64xf32>
    %119 = arith.mulf %117, %118 : vector<16x64xf32>
    %120 = vector.extract_strided_slice %79 {offsets = [0, 1], sizes = [16, 1], strides = [1, 1]} : vector<16x8xf32> to vector<16x1xf32>
    %121 = vector.extract_strided_slice %76 {offsets = [1, 0], sizes = [1, 64], strides = [1, 1]} : vector<8x64xf32> to vector<1x64xf32>
    %122 = vector.broadcast %120 : vector<16x1xf32> to vector<16x64xf32>
    %123 = vector.broadcast %121 : vector<1x64xf32> to vector<16x64xf32>
    %124 = arith.mulf %122, %123 : vector<16x64xf32>
    %125 = vector.extract_strided_slice %79 {offsets = [0, 2], sizes = [16, 1], strides = [1, 1]} : vector<16x8xf32> to vector<16x1xf32>
    %126 = vector.extract_strided_slice %76 {offsets = [2, 0], sizes = [1, 64], strides = [1, 1]} : vector<8x64xf32> to vector<1x64xf32>
    %127 = vector.broadcast %125 : vector<16x1xf32> to vector<16x64xf32>
    %128 = vector.broadcast %126 : vector<1x64xf32> to vector<16x64xf32>
    %129 = arith.mulf %127, %128 : vector<16x64xf32>
    %130 = vector.extract_strided_slice %79 {offsets = [0, 3], sizes = [16, 1], strides = [1, 1]} : vector<16x8xf32> to vector<16x1xf32>
    %131 = vector.extract_strided_slice %76 {offsets = [3, 0], sizes = [1, 64], strides = [1, 1]} : vector<8x64xf32> to vector<1x64xf32>
    %132 = vector.broadcast %130 : vector<16x1xf32> to vector<16x64xf32>
    %133 = vector.broadcast %131 : vector<1x64xf32> to vector<16x64xf32>
    %134 = arith.mulf %132, %133 : vector<16x64xf32>
    %135 = vector.extract_strided_slice %79 {offsets = [0, 4], sizes = [16, 1], strides = [1, 1]} : vector<16x8xf32> to vector<16x1xf32>
    %136 = vector.extract_strided_slice %76 {offsets = [4, 0], sizes = [1, 64], strides = [1, 1]} : vector<8x64xf32> to vector<1x64xf32>
    %137 = vector.broadcast %135 : vector<16x1xf32> to vector<16x64xf32>
    %138 = vector.broadcast %136 : vector<1x64xf32> to vector<16x64xf32>
    %139 = arith.mulf %137, %138 : vector<16x64xf32>
    %140 = vector.extract_strided_slice %79 {offsets = [0, 5], sizes = [16, 1], strides = [1, 1]} : vector<16x8xf32> to vector<16x1xf32>
    %141 = vector.extract_strided_slice %76 {offsets = [5, 0], sizes = [1, 64], strides = [1, 1]} : vector<8x64xf32> to vector<1x64xf32>
    %142 = vector.broadcast %140 : vector<16x1xf32> to vector<16x64xf32>
    %143 = vector.broadcast %141 : vector<1x64xf32> to vector<16x64xf32>
    %144 = arith.mulf %142, %143 : vector<16x64xf32>
    %145 = vector.extract_strided_slice %79 {offsets = [0, 6], sizes = [16, 1], strides = [1, 1]} : vector<16x8xf32> to vector<16x1xf32>
    %146 = vector.extract_strided_slice %76 {offsets = [6, 0], sizes = [1, 64], strides = [1, 1]} : vector<8x64xf32> to vector<1x64xf32>
    %147 = vector.broadcast %145 : vector<16x1xf32> to vector<16x64xf32>
    %148 = vector.broadcast %146 : vector<1x64xf32> to vector<16x64xf32>
    %149 = arith.mulf %147, %148 : vector<16x64xf32>
    %150 = vector.extract_strided_slice %79 {offsets = [0, 7], sizes = [16, 1], strides = [1, 1]} : vector<16x8xf32> to vector<16x1xf32>
    %151 = vector.extract_strided_slice %76 {offsets = [7, 0], sizes = [1, 64], strides = [1, 1]} : vector<8x64xf32> to vector<1x64xf32>
    %152 = vector.broadcast %150 : vector<16x1xf32> to vector<16x64xf32>
    %153 = vector.broadcast %151 : vector<1x64xf32> to vector<16x64xf32>
    %154 = arith.mulf %152, %153 : vector<16x64xf32>
    %155 = arith.mulf %86, %70 : vector<16x64xf32>
    %156 = arith.addf %155, %119 : vector<16x64xf32>
    %157 = vector.extract_strided_slice %82 {offsets = [0, 0], sizes = [16, 1], strides = [1, 1]} : vector<16x8xf32> to vector<16x1xf32>
    %158 = vector.broadcast %157 : vector<16x1xf32> to vector<16x64xf32>
    %159 = arith.mulf %156, %158 : vector<16x64xf32>
    %cst_46 = arith.constant dense<0.000000e+00> : vector<64xf32>
    %160 = vector.multi_reduction <add>, %159, %cst_46 [0] : vector<16x64xf32> to vector<64xf32>
    %161 = vector.shape_cast %160 : vector<64xf32> to vector<1x64xf32>
    %162 = arith.mulf %90, %156 : vector<16x64xf32>
    %163 = arith.addf %162, %124 : vector<16x64xf32>
    %164 = vector.extract_strided_slice %82 {offsets = [0, 1], sizes = [16, 1], strides = [1, 1]} : vector<16x8xf32> to vector<16x1xf32>
    %165 = vector.broadcast %164 : vector<16x1xf32> to vector<16x64xf32>
    %166 = arith.mulf %163, %165 : vector<16x64xf32>
    %cst_47 = arith.constant dense<0.000000e+00> : vector<64xf32>
    %167 = vector.multi_reduction <add>, %166, %cst_47 [0] : vector<16x64xf32> to vector<64xf32>
    %168 = vector.shape_cast %167 : vector<64xf32> to vector<1x64xf32>
    %169 = arith.mulf %94, %163 : vector<16x64xf32>
    %170 = arith.addf %169, %129 : vector<16x64xf32>
    %171 = vector.extract_strided_slice %82 {offsets = [0, 2], sizes = [16, 1], strides = [1, 1]} : vector<16x8xf32> to vector<16x1xf32>
    %172 = vector.broadcast %171 : vector<16x1xf32> to vector<16x64xf32>
    %173 = arith.mulf %170, %172 : vector<16x64xf32>
    %cst_48 = arith.constant dense<0.000000e+00> : vector<64xf32>
    %174 = vector.multi_reduction <add>, %173, %cst_48 [0] : vector<16x64xf32> to vector<64xf32>
    %175 = vector.shape_cast %174 : vector<64xf32> to vector<1x64xf32>
    %176 = arith.mulf %98, %170 : vector<16x64xf32>
    %177 = arith.addf %176, %134 : vector<16x64xf32>
    %178 = vector.extract_strided_slice %82 {offsets = [0, 3], sizes = [16, 1], strides = [1, 1]} : vector<16x8xf32> to vector<16x1xf32>
    %179 = vector.broadcast %178 : vector<16x1xf32> to vector<16x64xf32>
    %180 = arith.mulf %177, %179 : vector<16x64xf32>
    %cst_49 = arith.constant dense<0.000000e+00> : vector<64xf32>
    %181 = vector.multi_reduction <add>, %180, %cst_49 [0] : vector<16x64xf32> to vector<64xf32>
    %182 = vector.shape_cast %181 : vector<64xf32> to vector<1x64xf32>
    %183 = arith.mulf %102, %177 : vector<16x64xf32>
    %184 = arith.addf %183, %139 : vector<16x64xf32>
    %185 = vector.extract_strided_slice %82 {offsets = [0, 4], sizes = [16, 1], strides = [1, 1]} : vector<16x8xf32> to vector<16x1xf32>
    %186 = vector.broadcast %185 : vector<16x1xf32> to vector<16x64xf32>
    %187 = arith.mulf %184, %186 : vector<16x64xf32>
    %cst_50 = arith.constant dense<0.000000e+00> : vector<64xf32>
    %188 = vector.multi_reduction <add>, %187, %cst_50 [0] : vector<16x64xf32> to vector<64xf32>
    %189 = vector.shape_cast %188 : vector<64xf32> to vector<1x64xf32>
    %190 = arith.mulf %106, %184 : vector<16x64xf32>
    %191 = arith.addf %190, %144 : vector<16x64xf32>
    %192 = vector.extract_strided_slice %82 {offsets = [0, 5], sizes = [16, 1], strides = [1, 1]} : vector<16x8xf32> to vector<16x1xf32>
    %193 = vector.broadcast %192 : vector<16x1xf32> to vector<16x64xf32>
    %194 = arith.mulf %191, %193 : vector<16x64xf32>
    %cst_51 = arith.constant dense<0.000000e+00> : vector<64xf32>
    %195 = vector.multi_reduction <add>, %194, %cst_51 [0] : vector<16x64xf32> to vector<64xf32>
    %196 = vector.shape_cast %195 : vector<64xf32> to vector<1x64xf32>
    %197 = arith.mulf %110, %191 : vector<16x64xf32>
    %198 = arith.addf %197, %149 : vector<16x64xf32>
    %199 = vector.extract_strided_slice %82 {offsets = [0, 6], sizes = [16, 1], strides = [1, 1]} : vector<16x8xf32> to vector<16x1xf32>
    %200 = vector.broadcast %199 : vector<16x1xf32> to vector<16x64xf32>
    %201 = arith.mulf %198, %200 : vector<16x64xf32>
    %cst_52 = arith.constant dense<0.000000e+00> : vector<64xf32>
    %202 = vector.multi_reduction <add>, %201, %cst_52 [0] : vector<16x64xf32> to vector<64xf32>
    %203 = vector.shape_cast %202 : vector<64xf32> to vector<1x64xf32>
    %204 = arith.mulf %114, %198 : vector<16x64xf32>
    %205 = arith.addf %204, %154 : vector<16x64xf32>
    %206 = vector.extract_strided_slice %82 {offsets = [0, 7], sizes = [16, 1], strides = [1, 1]} : vector<16x8xf32> to vector<16x1xf32>
    %207 = vector.broadcast %206 : vector<16x1xf32> to vector<16x64xf32>
    %208 = arith.mulf %205, %207 : vector<16x64xf32>
    %cst_53 = arith.constant dense<0.000000e+00> : vector<64xf32>
    %209 = vector.multi_reduction <add>, %208, %cst_53 [0] : vector<16x64xf32> to vector<64xf32>
    %210 = vector.shape_cast %209 : vector<64xf32> to vector<1x64xf32>
    %211 = tpu.concatenate %161, %168, %175, %182, %189, %196, %203, %210 in 0 : vector<1x64xf32>, vector<1x64xf32>, vector<1x64xf32>, vector<1x64xf32>, vector<1x64xf32>, vector<1x64xf32>, vector<1x64xf32>, vector<1x64xf32> -> vector<8x64xf32>
    %212 = arith.index_cast %72 : i32 to index
    %c0_54 = arith.constant 0 : index
    %213 = vector.load %arg18[%212, %c0_54] : memref<8x64xf32, #tpu.memory_space<vmem>>, vector<8x64xf32>
    tpu.vector_store %arg18[%212, %c0_54], %211 {strides = array<i32>} : memref<8x64xf32, #tpu.memory_space<vmem>>, vector<8x64xf32>,
    %c1_i32 = arith.constant 1 : i32
    %c0_55 = arith.constant 0 : index
    %c0_56 = arith.constant 0 : index
    %214 = vector.load %arg12[%c0_55, %c0_56] : memref<16x64xf32, #tpu.memory_space<vmem>>, vector<16x64xf32>
    tpu.vector_store %arg12[%c0_55, %c0_56], %205 {strides = array<i32>} : memref<16x64xf32, #tpu.memory_space<vmem>>, vector<16x64xf32>,
    %c0_57 = arith.constant 0 : index
    %c0_58 = arith.constant 0 : index
    %215 = vector.load %arg18[%c0_57, %c0_58] : memref<8x64xf32, #tpu.memory_space<vmem>>, vector<8x64xf32>
    %c0_59 = arith.constant 0 : index
    %c0_60 = arith.constant 0 : index
    %216 = vector.load %arg9[%c0_59, %c0_60] : memref<1x64xf32, #tpu.memory_space<vmem>>, vector<1x64xf32>
    %217 = vector.broadcast %216 : vector<1x64xf32> to vector<8x64xf32>
    %218 = arith.mulf %38, %217 : vector<8x64xf32>
    %219 = arith.addf %215, %218 : vector<8x64xf32>
    %220 = arith.negf %8 : vector<8x64xf32>
    %221 = math.exp %220 : vector<8x64xf32>
    %cst_61 = arith.constant 1.000000e+00 : f32
    %222 = vector.broadcast %cst_61 : f32 to vector<8x64xf32>
    %223 = arith.addf %222, %221 : vector<8x64xf32>
    %224 = arith.divf %222, %223 : vector<8x64xf32>
    %225 = arith.mulf %8, %224 : vector<8x64xf32>
    %226 = arith.mulf %219, %225 : vector<8x64xf32>
    %227 = arith.truncf %226 : vector<8x64xf32> to vector<8x64xbf16>
    %c0_62 = arith.constant 0 : index
    %c0_63 = arith.constant 0 : index
    %228 = vector.load %arg10[%c0_62, %c0_63] : memref<64x128xbf16, #tpu.memory_space<vmem>>, vector<64x128xbf16>
    %cst_64 = arith.constant dense<0.000000e+00> : vector<8x128xf32>
    %229 = tpu.matmul %227, %228, %cst_64 {dimension_numbers = #tpu.dot_dimension_numbers<[1], [0], [0], [1], [0, 0, 1, 1], [], []>} : vector<8x64xbf16>, vector<64x128xbf16>, vector<8x128xf32> -> vector<8x128xf32>
    %c0_65 = arith.constant 0 : index
    %c0_66 = arith.constant 0 : index
    %c0_67 = arith.constant 0 : index
    %230 = vector.load %arg11[%c0_65, %c0_66, %c0_67] : memref<1x8x128xf32, #tpu.memory_space<vmem>>, vector<1x8x128xf32>
    %231 = vector.shape_cast %230 : vector<1x8x128xf32> to vector<8x128xf32>
    %232 = vector.shape_cast %229 : vector<8x128xf32> to vector<1x8x128xf32>
    tpu.vector_store %arg11[%c0_65, %c0_66, %c0_67], %232 {strides = array<i32>} : memref<1x8x128xf32, #tpu.memory_space<vmem>>, vector<1x8x128xf32>,
    return
  }
  func.func @transform_0(%arg0: i32, %arg1: i32) -> (i32, i32, i32) {
    %c0_i32 = arith.constant 0 : i32
    %c0_i32_0 = arith.constant 0 : i32
    return %arg0, %arg1, %c0_i32 : i32, i32, i32
  }
  func.func @transform_1(%arg0: i32, %arg1: i32) -> (i32, i32) {
    %c0_i32 = arith.constant 0 : i32
    %c0_i32_0 = arith.constant 0 : i32
    %c0_i32_1 = arith.constant 0 : i32
    return %c0_i32, %c0_i32_0 : i32, i32
  }
  func.func @transform_2(%arg0: i32, %arg1: i32) -> (i32, i32) {
    %c0_i32 = arith.constant 0 : i32
    %c0_i32_0 = arith.constant 0 : i32
    %c0_i32_1 = arith.constant 0 : i32
    return %c0_i32, %c0_i32_0 : i32, i32
  }
  func.func @transform_3(%arg0: i32, %arg1: i32) -> (i32, i32) {
    %c0_i32 = arith.constant 0 : i32
    %c0_i32_0 = arith.constant 0 : i32
    %c0_i32_1 = arith.constant 0 : i32
    return %c0_i32, %c0_i32_0 : i32, i32
  }
  func.func @transform_4(%arg0: i32, %arg1: i32) -> (i32, i32) {
    %c0_i32 = arith.constant 0 : i32
    %c0_i32_0 = arith.constant 0 : i32
    %c0_i32_1 = arith.constant 0 : i32
    return %c0_i32, %c0_i32_0 : i32, i32
  }
  func.func @transform_5(%arg0: i32, %arg1: i32) -> (i32, i32) {
    %c0_i32 = arith.constant 0 : i32
    %c0_i32_0 = arith.constant 0 : i32
    %c0_i32_1 = arith.constant 0 : i32
    return %c0_i32, %c0_i32_0 : i32, i32
  }
  func.func @transform_6(%arg0: i32, %arg1: i32) -> (i32, i32) {
    %c0_i32 = arith.constant 0 : i32
    %c0_i32_0 = arith.constant 0 : i32
    %c0_i32_1 = arith.constant 0 : i32
    return %c0_i32, %c0_i32_0 : i32, i32
  }
  func.func @transform_7(%arg0: i32, %arg1: i32) -> (i32, i32) {
    %c0_i32 = arith.constant 0 : i32
    %c0_i32_0 = arith.constant 0 : i32
    %c0_i32_1 = arith.constant 0 : i32
    return %c0_i32, %c0_i32_0 : i32, i32
  }
  func.func @transform_8(%arg0: i32, %arg1: i32) -> (i32, i32) {
    %c0_i32 = arith.constant 0 : i32
    %c0_i32_0 = arith.constant 0 : i32
    %c0_i32_1 = arith.constant 0 : i32
    return %c0_i32, %c0_i32_0 : i32, i32
  }
  func.func @transform_9(%arg0: i32, %arg1: i32) -> (i32, i32, i32) {
    %c0_i32 = arith.constant 0 : i32
    %c0_i32_0 = arith.constant 0 : i32
    return %arg0, %arg1, %c0_i32 : i32, i32, i32
  }
}

</mosaic_0001>

<bundles_post_ra>
// kernel: tpu_custom_call.1
= control target key start
LH: loop header
LB: loop body
LE: loop exit
PB: predicated region body
PF: predicated region fallthrough
CT: control target
= control target key end

     0   :  { %s2671_s0 = inlined_call_operand.hbm [shape: bf16[2,16,32], index: 0, kind: input, shape index: {}]   ;;  %s2672_s1 = inlined_call_operand.hbm [shape: bf16[32,256], index: 1, kind: input, shape index: {}]   ;;  %s2673_s2 = inlined_call_operand.vmem [shape: f32[4,64], index: 2, kind: input, shape index: {}]   ;;  %s2674_s3 = inlined_call_operand.vmem [shape: f32[1,64], index: 3, kind: input, shape index: {}]   ;;  %s2675_s4 = inlined_call_operand.hbm [shape: bf16[64,384], index: 4, kind: input, shape index: {}]   ;;  %s2676_s5 = inlined_call_operand.vmem [shape: bf16[2,64], index: 5, kind: input, shape index: {}]   ;;  %s2677_s6 = inlined_call_operand.vmem [shape: f32[16,64], index: 6, kind: input, shape index: {}]   ;;  %s2678_s7 = inlined_call_operand.vmem [shape: f32[1,64], index: 7, kind: input, shape index: {}]   ;;  %s2679_s8 = inlined_call_operand.hbm [shape: bf16[64,128], index: 8, kind: input, shape index: {}]   ;;  %s2680_s9 = inlined_call_operand.hbm [shape: f32[2,16,128], index: 9, kind: output, shape index: {}]  }
   0x1   :  { %2689 = sst [smem:[#allocation25_spill]] %s2672_s1 }
   0x2   :  { %2690 = sst [smem:[#allocation26_spill]] %s2675_s4 }
   0x3   :  { %2691 = sst [smem:[#allocation27_spill]] %s2676_s5 }
   0x4   :  { %2692 = sst [smem:[#allocation28_spill]] %s2677_s6 }
   0x5   :  { %2693 = sst [smem:[#allocation29_spill]] %s2678_s7 }
   0x6   :  { %2694 = sst [smem:[#allocation30_spill]] %s2679_s8 }
   0x7   :  { %2695 = sst [smem:[#allocation31_spill]] %s2680_s9 }
   0x8   :  { %14 = vsyncpa [#allocation10], 0 }
   0x9   :  { %16 = vsyncpa [#allocation10 + $0x1], 0 }
   0xa   :  { %17 = vsyncpa [#allocation13], 0 }
   0xb   :  { %18 = vsyncpa [#allocation16], 0 }
   0xc   :  { %19 = vsyncpa [#allocation11], 0 }
   0xd   :  { %21 = vsyncpa [#allocation11 + $0x1], 0  ;;  %s2088_s30 = smov 0   ;;  %s2090_s10 = smov 0  }
   0xe   :  { %s2092_s11 = smov 0   ;;  %s2094_s12 = smov 0  }
   0xf   :  { %s2096_s13 = smov 0   ;;  %s2098_s14 = smov 0  }
  0x10   :  { %s2100_s15 = smov 0   ;;  %s2102_s16 = smov 0  }
  0x11 LB: > { %2696 = sst [smem:[#allocation22_spill]] %s1986_s30  ;;  %s1471_s17 = sadd.s32 4294967295, %s2014_s16   ;;  %s2014_s16 = sphi %s2102_s16, %s27_s16   ;;  %s2010_s15 = sphi %s2100_s15, %s2731_s15   ;;  %s2006_s14 = sphi %s2098_s14, %s2730_s14   ;;  %s2002_s13 = sphi %s2096_s13, %s2729_s13   ;;  %s1998_s12 = sphi %s2094_s12, %s2728_s12   ;;  %s1994_s11 = sphi %s2092_s11, %s2727_s11   ;;  %s1990_s10 = sphi %s2090_s10, %s2726_s10   ;;  %s1986_s30 = sphi %s2088_s30, %s2725_s30  }
  0x12   : > { %2697 = sst [smem:[#allocation23_spill]] %s2002_s13  ;;  %s1472_s18 = sadd.s32 4294967294, %s2014_s16  }
  0x13   : > { %p61_p0 = scmp.ne.s32.totalorder %s1990_s10, %s1986_s30  ;;  %p2132_p1 = scmp.eq.s32.totalorder %s1471_s17, 0 }
  0x14   : > { %p2136_p2 = scmp.eq.s32.totalorder %s1471_s17, 3  ;;  %p261_p3 = scmp.eq.s32.totalorder %s1472_s18, 3 }
  0x15   : > { %s2698_s19 = scalar_select %p2132_p1, 1, 0 }
  0x16   : > { %s2699_s20 = scalar_select %p2136_p2, 1, 0 }
  0x17   : > { %p2142_p4 = por %p2132_p1, %p61_p0  ;;  %p1473_p5 = scmp.ge.s32.totalorder %s2014_s16, 1 }
  0x18   : > { %p2147_p6 = por %p261_p3, %p61_p0  ;;  %p268_p7 = scmp.lt.s32.totalorder %s2014_s16, 5 }
  0x19   : > { %s2700_s21 = scalar_select %p2142_p4, 1, 0 }
  0x1a   : > { %s2701_s22 = scalar_select %p2147_p6, 1, 0 }
  0x1b   : > { %p2152_p8 = pnand %p1473_p5, %p268_p7  ;;  %s2016_s24 = smov [#allocation12]  }
  0x1c   : > { %2702 = sst [smem:[#allocation24_spill]] %s2701_s22  ;;  %s280_s25 = sshll.u32 %s2016_s24, 4  ;;  %s281_s25 = int_to_ptr.vmem [resolvable:$true] %s280_s25 }
  0x1d   : > { %s2703_s23 = scalar_select %p2152_p8, 1, 0 }
  0x1e   : > { %p1584_p9 = pneg %p2152_p8  ;;  %s2017_s27 = smov [#allocation14]  }
  0x1f   : > { %s299_s28 = sshll.u32 %s2017_s27, 4  ;;  %s2705_s1 = sld [smem:[#allocation25_spill]]  ;;  %s2164_s28 = int_to_ptr.vmem [resolvable:$true] %s299_s28 }
  0x20   : > { %p2160_p10 = pnand %p1584_p9, %p2132_p1 }
  0x22   : > { %p2174_p12 = pneg %p2160_p10 }
  0x25   : > { %s1794_s18 = scalar_lea.hbm %s2705_s1, 512 }
  0x26   : > { %p1795_p11 = scmp.ne.s32.totalorder %s2705_s1, %s1794_s18  ;;  %p1801_p3 = scmp.lt.u32.totalorder %s1794_s18, %s2705_s1 }
  0x28   : > { %p1797_p13 = pnand %p2174_p12, %p1795_p11 }
  0x2a   : > { %p1798_p0 = pneg %p1797_p13 }
  0x2c   : > { %p1803_p5 = pnand %p1801_p3, %p1798_p0 }
  0x2e   : > { %1806 = shalt.err (!%p1803_p5)
}
  0x2f   : > { %s1807_s29 = scalar_lea.vmem %s281_s25, 512  ;;  %p1815_p1 = scmp.lt.s32.totalorder %s281_s25, %s281_s25 }
  0x30   : > { %p1808_p7 = scmp.ne.s32.totalorder %s281_s25, %s1807_s29  ;;  %p1816_p4 = scmp.lt.s32.totalorder %s1807_s29, %s1807_s29 }
  0x32   : > { %p1810_p9 = pnand %p1808_p7, %p2174_p12  ;;  %p1817_p8 = por %p1816_p4, %p1815_p1 }
  0x34   : > { %p1811_p6 = pneg %p1810_p9 }
  0x36   : > { %p1818_p2 = pnand %p1817_p8, %p1811_p6 }
  0x38   : > { %1821 = shalt.err (!%p1818_p2)
}
  0x39   : > { %s2018_s30 = smov 128   ;;  %s2019_s22 = smov 8  }
  0x3a   : > { %1587 = dma.hbm_to_vmem [thread:$0]  (!%p2160_p10), %s2705_s1, 512, %s281_s25, [#allocation13], %s2018_s30, %s2018_s30, %s2019_s22  }
  0x3b   : > { %s2707_s4 = sld [smem:[#allocation26_spill]] }
  0x41   : > { %s1822_s7 = scalar_lea.hbm %s2707_s4, 1536 }
  0x42   : > { %p1823_p11 = scmp.ne.s32.totalorder %s2707_s4, %s1822_s7  ;;  %p1829_p4 = scmp.lt.u32.totalorder %s1822_s7, %s2707_s4 }
  0x44   : > { %p1825_p1 = pnand %p1823_p11, %p2174_p12 }
  0x46   : > { %p1826_p2 = pneg %p1825_p1 }
  0x48   : > { %p1831_p6 = pnand %p1829_p4, %p1826_p2 }
  0x4a   : > { %1834 = shalt.err (!%p1831_p6)
}
  0x4b   : > { %s1835_s25 = scalar_lea.vmem %s2164_s28, 1536  ;;  %p1843_p3 = scmp.lt.s32.totalorder %s2164_s28, %s2164_s28 }
  0x4c   : > { %p1836_p8 = scmp.ne.s32.totalorder %s2164_s28, %s1835_s25  ;;  %p1844_p5 = scmp.lt.s32.totalorder %s1835_s25, %s1835_s25 }
  0x4e   : > { %p1838_p13 = pnand %p1836_p8, %p2174_p12  ;;  %p1845_p7 = por %p1844_p5, %p1843_p3 }
  0x50   : > { %p1839_p0 = pneg %p1838_p13 }
  0x52   : > { %p1846_p9 = pnand %p1845_p7, %p1839_p0 }
  0x54   : > { %1849 = shalt.err (!%p1846_p9)
}
  0x55   : > { %s2020_s6 = smov 192   ;;  %s2021_s5 = smov 12  }
  0x56   : > { %1590 = dma.hbm_to_vmem [thread:$0]  (!%p2160_p10), %s2707_s4, 1536, %s2164_s28, [#allocation13], %s2020_s6, %s2020_s6, %s2021_s5  }
  0x57   : > { %s2022_s30 = smov [#allocation15]   ;;  %s2708_s8 = sld [smem:[#allocation30_spill]] }
  0x58   : > { %s321_s22 = sshll.u32 %s2022_s30, 4  ;;  %s322_s22 = int_to_ptr.vmem [resolvable:$true] %s321_s22 }
  0x5d   : > { %s1850_s18 = scalar_lea.hbm %s2708_s8, 512 }
  0x5e   : > { %p1851_p11 = scmp.ne.s32.totalorder %s2708_s8, %s1850_s18  ;;  %p1857_p4 = scmp.lt.u32.totalorder %s1850_s18, %s2708_s8 }
  0x60   : > { %p1853_p1 = pnand %p1851_p11, %p2174_p12 }
  0x62   : > { %p1854_p2 = pneg %p1853_p1 }
  0x64   : > { %p1859_p6 = pnand %p1857_p4, %p1854_p2 }
  0x66   : > { %1862 = shalt.err (!%p1859_p6)
}
  0x67   : > { %s1863_s28 = scalar_lea.vmem %s322_s22, 512  ;;  %p1871_p3 = scmp.lt.s32.totalorder %s322_s22, %s322_s22 }
  0x68   : > { %p1864_p8 = scmp.ne.s32.totalorder %s322_s22, %s1863_s28  ;;  %p1872_p5 = scmp.lt.s32.totalorder %s1863_s28, %s1863_s28 }
  0x6a   : > { %p1866_p13 = pnand %p1864_p8, %p2174_p12  ;;  %p1873_p7 = por %p1872_p5, %p1871_p3 }
  0x6c   : > { %p1867_p0 = pneg %p1866_p13 }
  0x6e   : > { %p1874_p9 = pnand %p1873_p7, %p1867_p0 }
  0x70   : > { %1877 = shalt.err (!%p1874_p9)
}
  0x71   : > { %s2023_s6 = smov 64   ;;  %s2024_s1 = smov 4  }
  0x72   : > { %1593 = dma.hbm_to_vmem [thread:$0]  (!%p2160_p10), %s2708_s8, 512, %s322_s22, [#allocation16], %s2023_s6, %s2023_s6, %s2024_s1  }
  0x73   : > { %s36_s7 = sadd.s32 1, %s2006_s14  ;;  %s39_s13 = sadd.s32 1, %s2010_s15 }
  0x74   : > { %p37_p12 = scmp.ge.s32.totalorder %s36_s7, 2  ;;  %s48_s30 = sadd.s32 1, %s1994_s11 }
  0x75   : > { %p55_p11 = scmp.ne.s32.totalorder %s1994_s11, %s1990_s10  ;;  %p56_p1 = scmp.eq.s32.totalorder %s2014_s16, 0 }
  0x76   : > { %s2733_s7 = smov (%p37_p12, %s36_s7), 0  ;;  %s2735_s13 = smov (!%p37_p12, %s39_s13), %s2010_s15 }
  0x77   : > { %s44_s9 = ssub.s32 %s2006_s14, %s2733_s7  ;;  %p41_p2 = scmp.ge.s32.totalorder %s2735_s13, 2 }
  0x78   : > { %p2709_p4 = scmp.ne.s32.totalorder %s2699_s20, 0  ;;  %p2248_p10 = por %p56_p1, %p55_p11 }
  0x79   : > { %p1605_p8 = scmp.lt.s32.totalorder %s2014_s16, 4  ;;  %s2737_s13 = smov (%p41_p2, %s2735_s13), 0 }
  0x7a   : > { %p2244_p6 = por %p2709_p4, %p55_p11  ;;  %s335_s17 = sand.u32 1, %s1994_s11  }
  0x7b   : > { %s1479_s18 = sshll.u32 %s2010_s15, 1  ;;  %s43_s27 = ssub.s32 %s2010_s15, %s2737_s13 }
  0x7c   : > { %s45_s29 = sor.u32 %s44_s9, %s43_s27  ;;  %s1478_s25 = sshll.u32 %s335_s17, 2 }
  0x7d   : > { %p46_p13 = scmp.eq.s32.totalorder %s45_s29, 0  ;;  %s344_s20 = sadd.s32 %s2006_s14, %s1479_s18 }
  0x7e   : > { %s339_s28 = scalar_lea.vmem [#allocation9], %s1478_s25  ;;  %s1480_s24 = sshll.u32 %s344_s20, 6 }
  0x7f   : > { %s348_s6 = sshll.u32 %s339_s28, 4  ;;  %s2268_s8 = scalar_lea.hbm %s2671_s0, %s1480_s24  ;;  %s2263_s6 = int_to_ptr.vmem [resolvable:$true] %s348_s6 }
  0x80   : > { %s2261_s1 = scalar_select %p46_p13, %s1994_s11, %s48_s30  }
  0x81   : > { %p2274_p0 = pnand %p1605_p8, %p2248_p10  ;;  %s336_s30 = scalar_lea.sflag [#allocation10], %s335_s17 }
  0x82   : > { %s1878_s18 = scalar_lea.hbm %s2268_s8, 64  ;;  %s1883_s27 = scalar_lea.hbm %s2671_s0, 256 }
  0x83   : > { %p1879_p3 = scmp.ne.s32.totalorder %s2268_s8, %s1878_s18  ;;  %p1880_p5 = pneg %p2274_p0 }
  0x84   : > { %p1884_p12 = scmp.lt.u32.totalorder %s2268_s8, %s2671_s0  ;;  %p1885_p11 = scmp.lt.u32.totalorder %s1883_s27, %s1878_s18 }
  0x85   : > { %p1881_p7 = pnand %p1880_p5, %p1879_p3  ;;  %p1887_p2 = scmp.lt.u32.totalorder %s1878_s18, %s2268_s8 }
  0x86   : > { %p1886_p1 = por %p1885_p11, %p1884_p12 }
  0x87   : > { %p1882_p9 = pneg %p1881_p7 }
  0x88   : > { %p1888_p4 = por %p1887_p2, %p1886_p1 }
  0x8a   : > { %p1889_p10 = pnand %p1888_p4, %p1882_p9 }
  0x8c   : > { %1892 = shalt.err (!%p1889_p10)
}
  0x8d   : > { %s1893_s17 = scalar_lea.vmem %s2263_s6, 64  ;;  %s2025_s20 = smov [#allocation9]  }
  0x8e   : > { %p1894_p8 = scmp.ne.s32.totalorder %s2263_s6, %s1893_s17  ;;  %s1898_s28 = sshll.u32 %s2025_s20, 4  ;;  %s1899_s28 = int_to_ptr.vmem [resolvable:$false] %s1898_s28 }
  0x8f   : > { %s1900_s24 = scalar_lea.vmem %s1899_s28, 128  ;;  %p1901_p7 = scmp.lt.s32.totalorder %s2263_s6, %s1899_s28 }
  0x90   : > { %p1896_p13 = pnand %p1894_p8, %p1880_p5  ;;  %p1902_p12 = scmp.lt.s32.totalorder %s1900_s24, %s1893_s17 }
  0x92   : > { %p1897_p3 = pneg %p1896_p13  ;;  %p1903_p11 = por %p1902_p12, %p1901_p7 }
  0x94   : > { %p1904_p1 = pnand %p1903_p11, %p1897_p3 }
  0x96   : > { %1907 = shalt.err (!%p1904_p1)
}
  0x97   : > { %1597 = dma.hbm_to_vmem [thread:$0]  (!%p2274_p0), %s2268_s8, 64, %s2263_s6, %s336_s30  }
  0x98   : > { %p2713_p9 = scmp.ne.s32.totalorder %s2703_s23, 0 }
  0x99   : > { %s2306_s5 = sand.u32 (!%p2713_p9), 1, %s1990_s10   ;;  %p2714_p5 = scmp.ne.s32.totalorder (!%p2713_p9), %s2700_s21, 0 }
  0x9a   : > { %357 = sbr.rel (%p2713_p9) target bundleno = 1301 (0x515), region = 56  ;;  %s1482_s18 = sshll.u32 (!%p2713_p9), %s2306_s5, 2 }
  0x9b   : > { %s360_s4 = scalar_lea.sflag (!%p2713_p9), [#allocation10], %s2306_s5  ;;  %s363_s22 = scalar_lea.vmem (!%p2713_p9), [#allocation9], %s1482_s18 }
  0xa1   : > { %1969 = dma.done.wait (%p2714_p5), %s360_s4, 64  }
  0xa2   : > { %1971 = vsyncadd (%p2714_p5), %s360_s4, 4294967232  ;;  %p2715_p2 = scmp.ne.s32.totalorder %s2698_s19, 0 }
  0xa4   : > { %1973 = dma.done.wait (%p2715_p2), [#allocation13], 2048  }
  0xa5   : > { %1975 = vsyncadd (%p2715_p2), [#allocation13], 4294965248 }
  0xa6   : > { %1977 = dma.done.wait (%p2715_p2), [#allocation16], 512  }
  0xa7   : > { %1979 = vsyncadd (%p2715_p2), [#allocation16], 4294966784  ;;  %s1486_s8 = sshll.u32 %s2306_s5, 3  ;;  %p1487_p0 = scmp.ne.s32.totalorder %s1998_s12, 0 }
  0xa8   : > { %s2323_s23 = scalar_lea.vmem [#allocation17], %s1486_s8  ;;  %vm415_vm0 = vcmask (!%p1487_p0), 523264   ;;  %v2026_v0 = vmov (!%p1487_p0), 0.0  }
  0xa9   : > { %414 = sbr.rel (%p1487_p0) target bundleno = 176 (0xb0), region = 76  ;;  %416 = vst.msk [vmem:[#allocation2] sm:$0xff] (!%p1487_p0), %vm415_vm0, %v2026_v0  ;;  %417 = vst.msk [vmem:[#allocation2 + $0x8] sm:$0xff] (!%p1487_p0), %vm415_vm0, %v2026_v0 }
  0xaa   : > { %418 = vst.msk [vmem:[#allocation3] sm:$0xff] (!%p1487_p0), %vm415_vm0, %v2026_v0 }
  0xb0 PF: > { %v1724_v1 = vld [vmem:[#allocation12 + $0x4] ss:$8 sps:$4 sm:$0xff]   ;;  %v1726_v2 = vld [vmem:[#allocation12] ss:$8 sps:$4 sm:$0xff]   ;;  %v2027_v3 = vmov 0   ;;  %vm444_vm1 = vcmask 261120  }
  0xb1   : > { %480 = vmatprep.mubr.bf16.mxu1 %v2027_v3  ;;  %1694 = vset.pattern.permute.xlu1 %v2027_v3  ;;  %v1727_v4 = vld [vmem:[#allocation12 + $0x14] ss:$8 sps:$4 sm:$0xff]   ;;  %v1729_v5 = vld [vmem:[#allocation12 + $0x10] ss:$8 sps:$4 sm:$0xff]   ;;  %v1730_v8 = vld [vmem:[#allocation14] ss:$12 sps:$4 sm:$0xff]  }
  0xb2   : > { %448 = vmatprep.subr.bf16.mxu1 %v1724_v1  ;;  %v419_v6 = vld [vmem:[%s363_s22] sm:$0xf]  ;;  %v1732_v7 = vld [vmem:[#allocation14 + $0x4] ss:$12 sps:$4 sm:$0xff]   ;;  %v1733_v9 = vld [vmem:[#allocation14 + $0x8] ss:$12 sps:$4 sm:$0xff]  }
  0xb3   : > { %449 = vmatpush1.bf16.msra.mxu1 %v1726_v2  ;;  %v2028_v10 = vmov 0.0   ;;  %v1736_v11 = vld [vmem:[#allocation14 + $0x1c] ss:$12 sps:$4 sm:$0xff]   ;;  %v1734_v12 = vld [vmem:[#allocation14 + $0x18] ss:$12 sps:$4 sm:$0xff]   ;;  %vm2029_vm2 = vmmov 0  }
  0xb4   : > { %450 = vmatprep.subr.bf16.mxu1 %v1727_v4  ;;  %1538 = vmatprep.subr.bf16.mxu0 %v2028_v10  ;;  %v1737_v13 = vld [vmem:[#allocation14 + $0x20] ss:$12 sps:$4 sm:$0xff]   ;;  %v1738_v15 = vld [vmem:[#allocation14 + $0x30] ss:$12 sps:$4 sm:$0xff]   ;;  %v1741_v16 = vld [vmem:[#allocation14 + $0x38] ss:$12 sps:$4 sm:$0xff]  }
  0xb5   : > { %1539 = vmatpush3.bf16.msra.mxu0 %v1733_v9  ;;  %v1740_v14 = vld [vmem:[#allocation14 + $0x34] ss:$12 sps:$4 sm:$0xff]   ;;  %1546 = vmatprep.mubr.msk.bf16.mxu0 %vm2029_vm2, %v2028_v10  ;;  %v1744_v17 = vld [vmem:[#allocation14 + $0x4c] ss:$12 sps:$4 sm:$0xff]   ;;  %v1745_v19 = vld [vmem:[#allocation14 + $0x50] ss:$12 sps:$4 sm:$0xff]  }
  0xb6   : > { %1540 = vmatprep.subr.bf16.mxu0 %v2028_v10  ;;  %v1742_v18 = vld [vmem:[#allocation14 + $0x48] ss:$12 sps:$4 sm:$0xff]   ;;  %vm489_vm3 = vcmask 523264   ;;  %v1494_v24 = vld [vmem:[%s2673_s2] ss:$0 sm:$0xff]  ;;  %vm537_vm4 = vcmask 523269  }
  0xb7   : > { %451 = vmatpush1.bf16.msra.mxu1 %v1729_v5  ;;  %v1493_v25 = vld [vmem:[%s2674_s3] ss:$0 sm:$0xff]  ;;  %v1495_v26 = vld [vmem:[%s2673_s2 + $0x1] ss:$0 sm:$0xff]  ;;  %v1496_v31 = vld [vmem:[%s2673_s2 + $0x2] ss:$0 sm:$0xff] }
  0xb8   : > { %623 = vmatprep.subr.bf16.mxu1 %v1732_v7  ;;  %v1497_v35 = vld [vmem:[%s2673_s2 + $0x3] ss:$0 sm:$0xff]  ;;  %s2716_s18 = sld [smem:[#allocation27_spill]]  ;;  %vm713_vm5 = vcmask 1040384   ;;  %vm704_vm6 = vcmask 130048   ;;  %vm709_vm7 = vcmask 15360  }
  0xb9   : > { %1541 = vmatpush3.bf16.msra.mxu0 %v1737_v13  ;;  %v2030_v60 = vmov 2   ;;  %v2031_v63 = vmov 1   ;;  %v2032_v1 = vmov 3   ;;  %v2033_v4 = vmov 4   ;;  %s2717_s8 = sld [smem:[#allocation28_spill]]  ;;  %s2718_s6 = sld [smem:[#allocation23_spill]] }
  0xba   : > { %1492 = vmatmul.mubr.msk.bf16.vlgmr.msra.gmra.mrb[0].mxu1 %vm444_vm1, %v419_v6  ;;  %1542 = vmatprep.subr.bf16.mxu0 %v2028_v10  ;;  %v2034_v5 = vmov 5   ;;  %v2035_v6 = vmov 7   ;;  %v2036_v7 = vmov 6   ;;  %vm1231_vm10 = vcmask 1041408   ;;  %s2719_s27 = sld [smem:[#allocation29_spill]]  ;;  %s1357_s20 = sshll.u32 %s2323_s23, 4  ;;  %s2618_s20 = int_to_ptr.vmem [resolvable:$true] %s1357_s20 }
  0xbb   : > { %655 = vmatprep.mubr.bf16.mxu1 %v2027_v3  ;;  %624 = vmatpush1.bf16.msra.mxu1 %v1730_v8  ;;  %vm1233_vm11 = vcmask 1042432   ;;  %vm1235_vm12 = vcmask 1043456   ;;  %vm1237_vm13 = vcmask 1044480   ;;  %vm1239_vm14 = vcmask 1045504   ;;  %s1342_s22 = scalar_lea.sflag [#allocation11], %s2306_s5  ;;  %s1908_s19 = scalar_lea.vmem %s2618_s20, 128 }
  0xbc   : > { %625 = vmatprep.subr.bf16.mxu1 %v1736_v11  ;;  %vm1241_vm15 = vcmask 1046528   ;;  %p1909_p4 = scmp.ne.s32.totalorder %s2618_s20, %s1908_s19 }
  0xbd   : > { %1543 = vmatpush3.bf16.msra.mxu0 %v1741_v16 }
  0xbe   : > { %1544 = vmatprep.subr.bf16.mxu0 %v2028_v10  ;;  %v708_v47 = vld [vmem:[%s2716_s18] sm:$0x1]  ;;  %s2720_s18 = sld [smem:[#allocation31_spill]]  ;;  %p1910_p10 = pnand %p1909_p4, %p2244_p6 }
  0xbf   : > { %626 = vmatpush1.bf16.msra.mxu1 %v1734_v12  ;;  %v715_v48 = vsel %vm713_vm5, %v708_v47, 0  ;;  %s1522_s29 = sshll.u32 %s2718_s6, 1 }
  0xc0   : > { %627 = vmatprep.subr.bf16.mxu1 %v1740_v14  ;;  %s1353_s25 = sadd.s32 %s1998_s12, %s1522_s29  ;;  %p1911_p8 = pneg %p1910_p10 }
  0xc1   : > { %1545 = vmatpush3.bf16.msra.mxu0 %v1745_v19  ;;  %s1523_s17 = sshll.u32 %s1353_s25, 7  ;;  %s2037_s12 = smov [#allocation17]  }
  0xc2   : > { %1556 = vmatprep.subr.bf16.mxu0 %v2028_v10  ;;  %s1912_s21 = sshll.u32 %s2037_s12, 4  ;;  %s1913_s21 = int_to_ptr.vmem [resolvable:$false] %s1912_s21 }
  0xc3   : > { %628 = vmatpush1.bf16.msra.mxu1 %v1738_v15  ;;  %s1914_s6 = scalar_lea.vmem %s1913_s21, 256  ;;  %p1915_p13 = scmp.lt.s32.totalorder %s2618_s20, %s1913_s21 }
  0xc4   : > { %629 = vmatprep.subr.bf16.mxu1 %v1744_v17  ;;  %s2616_s4 = scalar_lea.hbm %s2720_s18, %s1523_s17  ;;  %p1916_p3 = scmp.lt.s32.totalorder %s1914_s6, %s1908_s19 }
  0xc6   : > { %p1917_p7 = por %p1916_p3, %p1915_p13 }
  0xc7   : > { %630 = vmatpush1.bf16.msra.mxu1 %v1742_v18 }
  0xc8   : > { %1550 = vmatprep.subr.bf16.mxu1 %v2028_v10  ;;  %p1918_p12 = pnand %p1917_p7, %p1911_p8 }
 0x18d   : > { %v482_v20 = vpop.f32.mrb[0].mxu1 }
 0x18e   : > { %490 = vst.msk [vmem:[#allocation3 + $0x8] sm:$0xff] %vm489_vm3, %v482_v20  ;;  %v2338_v21 = vpop.f32.mrb[1].mxu1 }
 0x18f   : > { %v486_v22 = vpop.f32.mrb[2].mxu1 }
 0x190   : > { %v487_v23 = vpop.f32.mrb[3].mxu1 }
 0x195   : > { %v498_v27 = vld [vmem:[#allocation3 + $0x5] sm:$0xff] }
 0x196   : > { %v506_v28 = vld [vmem:[#allocation3 + $0x6] sm:$0xff]  ;;  %v504_v30 = vmul.f32 %v1494_v24, %v498_v27 }
 0x197   : > { %v514_v29 = vld [vmem:[#allocation3 + $0x7] sm:$0xff]  ;;  %v512_v33 = vmul.f32 %v1495_v26, %v506_v28  ;;  %v850_v26 = vlaneseq }
 0x198   : > { %538 = vst.msk [vmem:[#allocation3] sm:$0xe0] %vm537_vm4, %v482_v20  ;;  %v505_v32 = vadd.f32 %v1493_v25, %v504_v30  ;;  %v522_v34 = vld [vmem:[#allocation3 + $0x8] sm:$0xff]  ;;  %v520_v37 = vmul.f32 %v1496_v31, %v514_v29 }
 0x199   : > { %v528_v39 = vmul.f32 %v1497_v35, %v522_v34  ;;  %v2408_v30 = vshrl.u32 %v850_v26, 7 }
 0x19a   : > { %v513_v36 = vadd.f32 %v512_v33, %v505_v32  ;;  %v2418_v32 = vld [vmem:[%s2717_s8] sm:$0xff] }
 0x19b   : > { %v852_v31 = vsub.s32 0, %v2408_v30  ;;  %v862_v33 = vsub.s32 1, %v2408_v30 }
 0x19c   : > { %v521_v38 = vadd.f32 %v520_v37, %v513_v36 }
 0x19e   : > { %v529_v40 = vadd.f32 %v528_v39, %v521_v38  ;;  %v872_v38 = vsub.s32 2, %v2408_v30 }
 0x1a0   : > { %v1498_v41 = vmul.f32 -1.442695, %v529_v40 }
 0x1a2   : > { %1750 = vpow2.f32 %v1498_v41 }
 0x1ac   : > { %v1751_v42 = vpop.eup %1750 }
 0x1ad   : > { %v533_v43 = vadd.f32 1.0, %v1751_v42 }
 0x1af   : > { %1752 = vrcp.f32 %v533_v43  ;;  %v882_v43 = vsub.s32 3, %v2408_v30 }
 0x1b9   : > { %v1753_v44 = vpop.eup %1752 }
 0x1ba   : > { %v2355_v45 = vmul.f32 %v1753_v44, %v529_v40 }
 0x1bc   : > { %v539_v46 = vpack.c.bf16 %v2355_v45, %v2355_v45 }
 0x1be   : > { %1511 = vmatmul.mubr.msk.bf16.vlgmr.msra.gmra.mrb[4].mxu1 %vm489_vm3, %v539_v46  ;;  %1547 = vmatmul.mubr.msk.bf16.vlgmr.msra.gmra.mrb[0].mxu0 %vm489_vm3, %v539_v46 }
 0x1bf   : > { %1552 = vmatprep.mubr.msk.bf16.mxu1 %vm2029_vm2, %v2028_v10  ;;  %1564 = vmatprep.mubr.msk.bf16.mxu0 %vm2029_vm2, %v2028_v10 }
 0x1c0   : > { %1551 = vmatpush3.bf16.msra.mxu1 %v715_v48 }
 0x291   : > { %v657_v49 = vpop.f32.mrb[4].mxu1  ;;  %v698_v50 = vpop.f32.mrb[0].mxu0 }
 0x292   : > { %v707_v51 = vpack.c.bf16 %v657_v49, %v657_v49  ;;  %706 = vst.msk [vmem:[#allocation7] sm:$0xff] %vm704_vm6, %v698_v50  ;;  %v659_v52 = vpop.f32.mrb[5].mxu1  ;;  %v1548_v53 = vpop.f32.mrb[1].mxu0  ;;  %v892_v49 = vsub.s32 4, %v2408_v30 }
 0x293   : > { %705 = vst.msk [vmem:[#allocation6] sm:$0xff] %vm704_vm6, %v659_v52  ;;  %v661_v54 = vpop.f32.mrb[6].mxu1  ;;  %v701_v55 = vpop.f32.mrb[2].mxu0  ;;  %v1746_v52 = vld [vmem:[#allocation15] sm:$0xff]  }
 0x294   : > { %v662_v56 = vpop.f32.mrb[7].mxu1  ;;  %v1549_v57 = vpop.f32.mrb[3].mxu0  ;;  %1553 = vmatmul.mubr.msk.bf16.vlgmr.msra.gmra.mrb[8].mxu1 %vm709_vm7, %v707_v51  ;;  %1557 = vmatpush3.bf16.msra.mxu0 %v1746_v52 }
 0x295   : > { %v1747_v56 = vld [vmem:[#allocation15 + $0x8] sm:$0xff]   ;;  %1558 = vmatprep.subr.bf16.mxu0 %v2028_v10 }
 0x298   : > { %1559 = vmatpush3.bf16.msra.mxu0 %v1747_v56 }
 0x299   : > { %v817_v58 = vld [vmem:[#allocation7] sm:$0xff]  ;;  %1560 = vmatprep.subr.bf16.mxu0 %v2028_v10 }
 0x29a   : > { %818 = vxpose.xlu0.b32.start.end [1/1] (short) (narrow) %v817_v58, 16  ;;  %v784_v59 = vld [vmem:[#allocation6] sm:$0xff]  ;;  %v780_v58 = vld [vmem:[#allocation2] sm:$0xff] }
 0x29f   : > { %785 = vxpose.xlu0.b32.start.end [1/1] (short) (narrow) %v784_v59, 16  ;;  %v902_v59 = vsub.s32 5, %v2408_v30 }
 0x2c8   : > { %1696 = vset.pattern.permute.xlu0 %v2030_v60 }
 0x31a   : > { %v2370_v61 = vpop.trf.xlu0 }
 0x31b   : > { %1050 = vperm.xlu1 %1694, %v2370_v61   ;;  %1097 = vperm.xlu0 %1696, %v2370_v61  }
 0x31e   : > { %v2374_v62 = vpop.trf.xlu0 }
 0x31f   : > { %1695 = vset.pattern.permute.xlu1 %v2031_v63  ;;  %1706 = vset.pattern.permute.xlu0 %v2027_v3 }
 0x320   : > { %1074 = vperm.xlu1 %1695, %v2370_v61   ;;  %1055 = vperm.xlu0 %1706, %v2374_v62  }
 0x322   : > { %v801_v0 = vpop.trf.xlu0 }
 0x324   : > { %1697 = vset.pattern.permute.xlu1 %v2032_v1  ;;  %1711 = vset.pattern.permute.xlu0 %v2031_v63 }
 0x325   : > { %1120 = vperm.xlu1 %1697, %v2370_v61  }
 0x326   : > { %v2380_v2 = vpop.trf.xlu0 }
 0x327   : > { %951 = vperm.xlu0 %1711, %v2380_v2  }
 0x329   : > { %1698 = vset.pattern.permute.xlu1 %v2027_v3 }
 0x32a   : > { %932 = vperm.xlu1 %1698, %v801_v0  }
 0x32b   : > { %1712 = vset.pattern.permute.xlu0 %v2033_v4 }
 0x32c   : > { %1143 = vperm.xlu0 %1712, %v2370_v61  }
 0x32e   : > { %1699 = vset.pattern.permute.xlu1 %v2031_v63 }
 0x32f   : > { %947 = vperm.xlu1 %1699, %v801_v0  }
 0x330   : > { %1715 = vset.pattern.permute.xlu0 %v2034_v5 }
 0x331   : > { %1170 = vperm.xlu0 %1715, %v2374_v62  }
 0x333   : > { %1700 = vset.pattern.permute.xlu1 %v2030_v60 }
 0x334   : > { %961 = vperm.xlu1 %1700, %v801_v0  }
 0x335   : > { %1722 = vset.pattern.permute.xlu0 %v2035_v6 }
 0x336   : > { %1035 = vperm.xlu0 %1722, %v2380_v2  }
 0x338   : > { %1701 = vset.pattern.permute.xlu1 %v2032_v1 }
 0x339   : > { %975 = vperm.xlu1 %1701, %v801_v0  }
 0x33a   : > { %1212 = vperm.xlu0 %1722, %v2370_v61  }
 0x33d   : > { %1702 = vset.pattern.permute.xlu1 %v2033_v4 }
 0x33e   : > { %989 = vperm.xlu1 %1702, %v801_v0  }
 0x342   : > { %1703 = vset.pattern.permute.xlu1 %v2034_v5 }
 0x343   : > { %1003 = vperm.xlu1 %1703, %v801_v0  }
 0x347   : > { %1704 = vset.pattern.permute.xlu1 %v2036_v7 }
 0x348   : > { %1017 = vperm.xlu1 %1704, %v801_v0  }
 0x34c   : > { %1705 = vset.pattern.permute.xlu1 %v2035_v6 }
 0x34d   : > { %1031 = vperm.xlu1 %1705, %v801_v0  }
 0x351   : > { %1707 = vset.pattern.permute.xlu1 %v2031_v63 }
 0x352   : > { %1078 = vperm.xlu1 %1707, %v2374_v62  }
 0x356   : > { %1708 = vset.pattern.permute.xlu1 %v2030_v60 }
 0x357   : > { %1101 = vperm.xlu1 %1708, %v2374_v62  }
 0x35b   : > { %1709 = vset.pattern.permute.xlu1 %v2032_v1 }
 0x35c   : > { %1124 = vperm.xlu1 %1709, %v2374_v62  }
 0x360   : > { %1710 = vset.pattern.permute.xlu1 %v2027_v3 }
 0x361   : > { %937 = vperm.xlu1 %1710, %v2380_v2  }
 0x365   : > { %1713 = vset.pattern.permute.xlu1 %v2033_v4 }
 0x366   : > { %1147 = vperm.xlu1 %1713, %v2374_v62  }
 0x367   : > { %v751_v8 = vpop.f32.mrb[8].mxu1 }
 0x368   : > { %v760_v9 = vand.u32 2147483647, %v751_v8  ;;  %v1554_v11 = vpop.f32.mrb[9].mxu1  ;;  %v757_v24 = vmax.f32 %v751_v8, 0.0  ;;  %vm758_vm9 = vcmp.ne.f32.partialorder %v751_v8, %v751_v8 }
 0x369   : > { %v754_v12 = vpop.f32.mrb[10].mxu1 }
 0x36a   : > { %v761_v13 = vsub.f32 0.0, %v760_v9  ;;  %1714 = vset.pattern.permute.xlu1 %v2034_v5  ;;  %v1555_v14 = vpop.f32.mrb[11].mxu1 }
 0x36b   : > { %1166 = vperm.xlu1 %1714, %v2370_v61   ;;  %v1749_v14 = vld [vmem:[#allocation15 + $0x18] sm:$0xff]  }
 0x36c   : > { %v762_v15 = vmul.f32 1.442695, %v761_v13 }
 0x36e   : > { %1754 = vpow2.f32 %v762_v15 }
 0x36f   : > { %1716 = vset.pattern.permute.xlu1 %v2036_v7 }
 0x370   : > { %1189 = vperm.xlu1 %1716, %v2370_v61  }
 0x374   : > { %1717 = vset.pattern.permute.xlu1 %v2030_v60 }
 0x375   : > { %965 = vperm.xlu1 %1717, %v2380_v2  }
 0x378   : > { %v1755_v3 = vpop.eup %1754 }
 0x379   : > { %v764_v16 = vadd.f32 1.0, %v1755_v3  ;;  %1718 = vset.pattern.permute.xlu1 %v2032_v1  ;;  %v767_v17 = vmul.f32 -0.5, %v1755_v3  ;;  %v770_v19 = vand.u32 2147483647, %v1755_v3 }
 0x37a   : > { %979 = vperm.xlu1 %1718, %v2380_v2  }
 0x37b   : > { %1756 = vlog2.f32 %v764_v16  ;;  %v768_v18 = vadd.f32 1.0, %v767_v17  ;;  %vm771_vm8 = vcmp.lt.f32.partialorder %v770_v19, 0.0004427343 }
 0x37d   : > { %v769_v23 = vmul.f32 %v1755_v3, %v768_v18  ;;  %v922_v18 = vsub.s32 7, %v2408_v30 }
 0x37e   : > { %1719 = vset.pattern.permute.xlu1 %v2033_v4 }
 0x37f   : > { %993 = vperm.xlu1 %1719, %v2380_v2  }
 0x383   : > { %1720 = vset.pattern.permute.xlu1 %v2034_v5 }
 0x384   : > { %1007 = vperm.xlu1 %1720, %v2380_v2  }
 0x385   : > { %v1757_v20 = vpop.eup %1756 }
 0x386   : > { %v766_v22 = vmul.f32 0.6931472, %v1757_v20 }
 0x388   : > { %v772_v25 = vsel %vm771_vm8, %v769_v23, %v766_v22  ;;  %1721 = vset.pattern.permute.xlu1 %v2036_v7 }
 0x389   : > { %v773_v27 = vadd.f32 %v772_v25, %v757_v24  ;;  %1021 = vperm.xlu1 %1721, %v2380_v2   ;;  %v1748_v2 = vld [vmem:[#allocation15 + $0x10] sm:$0xff]  }
 0x38a   : > { %1561 = vmatpush3.bf16.msra.mxu0 %v1748_v2 }
 0x38b   : > { %v774_v28 = vsel %vm758_vm9, %v751_v8, %v773_v27  ;;  %1562 = vmatprep.subr.bf16.mxu0 %v2028_v10 }
 0x38c   : > { %775 = vst.msk [vmem:[#allocation4] sm:$0xff] %vm489_vm3, %v774_v28  ;;  %v776_v29 = vmul.f32 %v774_v28, %v2355_v45 }
 0x38d   : > { %1193 = vperm.xlu1 %1721, %v2374_v62  }
 0x38e   : > { %777 = vst.msk [vmem:[#allocation5] sm:$0xff] %vm489_vm3, %v776_v29  ;;  %1563 = vmatpush3.bf16.msra.mxu0 %v1749_v14 }
 0x391   : > { %1723 = vset.pattern.permute.xlu1 %v2035_v6  ;;  %v912_v6 = vsub.s32 6, %v2408_v30 }
 0x392   : > { %1216 = vperm.xlu1 %1723, %v2374_v62  }
 0x393   : > { %v2421_v34 = vld [vmem:[#allocation4] sm:$0xff] }
 0x394   : > { %v2424_v35 = vrot.slane %v2421_v34, %v852_v31  ;;  %v2429_v37 = vrot.slane %v2421_v34, %v862_v33  ;;  %v2435_v42 = vrot.slane %v2421_v34, %v872_v38  ;;  %v2441_v48 = vrot.slane %v2421_v34, %v882_v43 }
 0x395   : > { %v2446_v53 = vld [vmem:[#allocation5] sm:$0xff]  ;;  %v2453_v55 = vrot.slane %v2421_v34, %v892_v49  ;;  %v2464_v4 = vrot.slane %v2421_v34, %v902_v59  ;;  %v2478_v16 = vrot.slane %v2421_v34, %v912_v6  ;;  %v2490_v27 = vrot.slane %v2421_v34, %v922_v18 }
 0x396   : > { %v854_v36 = vmul.f32 %v2424_v35, %v2418_v32  ;;  %v864_v41 = vmul.f32 %v2429_v37, %v2418_v32  ;;  %v874_v47 = vmul.f32 %v2435_v42, %v2418_v32  ;;  %v884_v54 = vmul.f32 %v2441_v48, %v2418_v32 }
 0x397   : > { %v2458_v60 = vrot.slane %v2446_v53, %v852_v31  ;;  %v894_v1 = vmul.f32 %v2453_v55, %v2418_v32  ;;  %v2469_v8 = vrot.slane %v2446_v53, %v862_v33  ;;  %v904_v3 = vmul.f32 %v2464_v4, %v2418_v32 }
 0x398   : > { %v856_v39 = vmul.f32 1.442695, %v854_v36  ;;  %v866_v46 = vmul.f32 1.442695, %v864_v41  ;;  %v876_v51 = vmul.f32 1.442695, %v874_v47  ;;  %v2482_v20 = vrot.slane %v2446_v53, %v872_v38 }
 0x399   : > { %v886_v62 = vmul.f32 1.442695, %v884_v54  ;;  %v896_v13 = vmul.f32 1.442695, %v894_v1  ;;  %v906_v25 = vmul.f32 1.442695, %v904_v3  ;;  %v914_v10 = vmul.f32 %v2478_v16, %v2418_v32 }
 0x39a   : > { %v1051_v40 = vpop.permute.xlu1 %1050  ;;  %1758 = vpow2.f32 %v856_v39  ;;  %v2495_v31 = vrot.slane %v2446_v53, %v882_v43  ;;  %v924_v39 = vmul.f32 %v2490_v27, %v2418_v32  ;;  %v2504_v34 = vrot.slane %v2446_v53, %v892_v49 }
 0x39b   : > { %1760 = vpow2.f32 %v866_v46  ;;  %v916_v38 = vmul.f32 1.442695, %v914_v10  ;;  %v2513_v56 = vrot.slane %v2446_v53, %v902_v59  ;;  %v2527_v59 = vld [vmem:[%s2717_s8 + $0x8] sm:$0xff] }
 0x39c   : > { %1762 = vpow2.f32 %v876_v51  ;;  %v926_v43 = vmul.f32 1.442695, %v924_v39  ;;  %v865_v3 = vmul.f32 %v2429_v37, %v2527_v59 }
 0x39d   : > { %1764 = vpow2.f32 %v886_v62 }
 0x39e   : > { %1766 = vpow2.f32 %v896_v13 }
 0x39f   : > { %v1075_v44 = vpop.permute.xlu1 %1074  ;;  %1768 = vpow2.f32 %v906_v25 }
 0x3a0   : > { %1770 = vpow2.f32 %v916_v38 }
 0x3a1   : > { %1772 = vpow2.f32 %v926_v43 }
 0x3a4   : > { %v2444_v50 = vpop.permute.xlu1 %1120  ;;  %v1759_v57 = vpop.eup %1758 }
 0x3a5   : > { %v1044_v0 = vmul.f32 %v1759_v57, %v780_v58  ;;  %v1761_v7 = vpop.eup %1760 }
 0x3a6   : > { %v1763_v19 = vpop.eup %1762 }
 0x3a7   : > { %v1765_v29 = vpop.eup %1764 }
 0x3a9   : > { %v933_v61 = vpop.permute.xlu1 %932 }
 0x3aa   : > { %v944_v63 = vmul.f32 %v2458_v60, %v933_v61  ;;  %v2520_v61 = vrot.slane %v2446_v53, %v912_v6  ;;  %v855_v6 = vmul.f32 %v2424_v35, %v2527_v59  ;;  %v875_v35 = vmul.f32 %v2435_v42, %v2527_v59 }
 0x3ac   : > { %v1046_v5 = vadd.f32 %v1044_v0, %v944_v63  ;;  %v858_v14 = vmul.f32 1.442695, %v855_v6 }
 0x3ae   : > { %v2471_v9 = vmul.f32 %v1051_v40, %v1046_v5  ;;  %v948_v11 = vpop.permute.xlu1 %947  ;;  %v1069_v12 = vmul.f32 %v1761_v7, %v1046_v5  ;;  %v2532_v5 = vrot.slane %v2446_v53, %v922_v18  ;;  %1774 = vpow2.f32 %v858_v14  ;;  %v1098_v18 = vpop.permute.xlu0 %1097 }
 0x3af   : > { %v958_v15 = vmul.f32 %v2469_v8, %v948_v11  ;;  %v868_v53 = vmul.f32 1.442695, %v865_v3 }
 0x3b0   : > { %v1060_v43 = vsel %vm489_vm3, %v2471_v9, 0.0 }
 0x3b1   : > { %v1071_v17 = vadd.f32 %v1069_v12, %v958_v15  ;;  %1776 = vpow2.f32 %v868_v53 }
 0x3b3   : > { %v2484_v22 = vmul.f32 %v1075_v44, %v1071_v17  ;;  %v962_v23 = vpop.permute.xlu1 %961  ;;  %v1092_v24 = vmul.f32 %v1763_v19, %v1071_v17  ;;  %v1767_v44 = vpop.eup %1766  ;;  %v878_v19 = vmul.f32 1.442695, %v875_v35  ;;  %v915_v35 = vmul.f32 %v2478_v16, %v2527_v59 }
 0x3b4   : > { %v972_v26 = vmul.f32 %v2482_v20, %v962_v23  ;;  %v1769_v32 = vpop.eup %1768 }
 0x3b5   : > { %1778 = vpow2.f32 %v878_v19 }
 0x3b6   : > { %v2492_v28 = vadd.f32 %v1092_v24, %v972_v26  ;;  %v1056_v24 = vpop.permute.xlu0 %1055  ;;  %v781_v26 = vld [vmem:[#allocation2 + $0x8] sm:$0xff] }
 0x3b8   : > { %v976_v33 = vpop.permute.xlu1 %975  ;;  %v1115_v36 = vmul.f32 %v1765_v29, %v2492_v28 }
 0x3b9   : > { %v986_v40 = vmul.f32 %v2495_v31, %v976_v33 }
 0x3ba   : > { %v952_v37 = vpop.permute.xlu0 %951 }
 0x3bb   : > { %v1117_v41 = vadd.f32 %v1115_v36, %v986_v40  ;;  %v959_v39 = vmul.f32 %v2469_v8, %v952_v37 }
 0x3bd   : > { %v2507_v46 = vmul.f32 %v2444_v50, %v1117_v41  ;;  %v990_v47 = vpop.permute.xlu1 %989  ;;  %v1138_v51 = vmul.f32 %v1767_v44, %v1117_v41  ;;  %v1771_v50 = vpop.eup %1770  ;;  %v885_v44 = vmul.f32 %v2441_v48, %v2527_v59  ;;  %v895_v48 = vmul.f32 %v2453_v55, %v2527_v59 }
 0x3be   : > { %v1000_v52 = vmul.f32 %v2504_v34, %v990_v47  ;;  %v1773_v2 = vpop.eup %1772 }
 0x3bf   : > { %v1775_v25 = vpop.eup %1774  ;;  %v898_v6 = vmul.f32 1.442695, %v895_v48 }
 0x3c0   : > { %v2510_v54 = vadd.f32 %v1138_v51, %v1000_v52  ;;  %v1045_v33 = vmul.f32 %v1775_v25, %v781_v26  ;;  %v1777_v38 = vpop.eup %1776  ;;  %v1104_v25 = vmul.f32 %v1098_v18, %v2492_v28 }
 0x3c2   : > { %v1004_v30 = vpop.permute.xlu1 %1003  ;;  %v1161_v49 = vmul.f32 %v1769_v32, %v2510_v54 }
 0x3c3   : > { %v1014_v57 = vmul.f32 %v2513_v56, %v1004_v30 }
 0x3c5   : > { %v2517_v58 = vadd.f32 %v1161_v49, %v1014_v57  ;;  %v888_v49 = vmul.f32 1.442695, %v885_v44 }
 0x3c7   : > { %v1018_v62 = vpop.permute.xlu1 %1017  ;;  %v1184_v63 = vmul.f32 %v1771_v50, %v2517_v58  ;;  %v1083_v50 = vsel %vm489_vm3, %v2484_v22, 0.0  ;;  %1780 = vpow2.f32 %v888_v49 }
 0x3c8   : > { %v1028_v0 = vmul.f32 %v2520_v61, %v1018_v62  ;;  %1782 = vpow2.f32 %v898_v6 }
 0x3ca   : > { %v2529_v1 = vadd.f32 %v1184_v63, %v1028_v0 }
 0x3cc   : > { %v1032_v7 = vpop.permute.xlu1 %1031  ;;  %v1207_v11 = vmul.f32 %v1773_v2, %v2529_v1 }
 0x3cd   : > { %v1042_v12 = vmul.f32 %v2532_v5, %v1032_v7 }
 0x3cf   : > { %v2538_v13 = vadd.f32 %v1207_v11, %v1042_v12  ;;  %v905_v11 = vmul.f32 %v2464_v4, %v2527_v59 }
 0x3d1   : > { %1244 = vst.msk [vmem:[#allocation2] sm:$0xff] %vm489_vm3, %v2538_v13  ;;  %v1079_v15 = vpop.permute.xlu1 %1078  ;;  %v908_v22 = vmul.f32 1.442695, %v905_v11 }
 0x3d3   : > { %1784 = vpow2.f32 %v908_v22 }
 0x3d6   : > { %v1102_v17 = vpop.permute.xlu1 %1101 }
 0x3db   : > { %v2546_v23 = vpop.permute.xlu1 %1124 }
 0x3e0   : > { %v938_v10 = vpop.permute.xlu1 %937 }
 0x3e1   : > { %v945_v29 = vmul.f32 %v2458_v60, %v938_v10  ;;  %v1779_v60 = vpop.eup %1778 }
 0x3e2   : > { %v1781_v10 = vpop.eup %1780 }
 0x3e3   : > { %v1047_v36 = vadd.f32 %v1045_v33, %v945_v29  ;;  %v918_v33 = vmul.f32 1.442695, %v915_v35  ;;  %v1783_v44 = vpop.eup %1782 }
 0x3e5   : > { %v1059_v42 = vmul.f32 %v1056_v24, %v1047_v36  ;;  %v1070_v40 = vmul.f32 %v1777_v38, %v1047_v36  ;;  %v2550_v41 = vpop.permute.xlu1 %1147  ;;  %1786 = vpow2.f32 %v918_v33 }
 0x3e7   : > { %v1061_v47 = vsel %vm489_vm3, %v1059_v42, 0.0  ;;  %v1072_v51 = vadd.f32 %v1070_v40, %v959_v39  ;;  %v925_v39 = vmul.f32 %v2490_v27, %v2527_v59 }
 0x3e8   : > { %v1062_v52 = vadd.f32 %v1061_v47, %v1060_v43  ;;  %v1144_v43 = vpop.permute.xlu0 %1143 }
 0x3e9   : > { %v1082_v32 = vmul.f32 %v1079_v15, %v1072_v51  ;;  %v1093_v30 = vmul.f32 %v1779_v60, %v1072_v51  ;;  %v928_v47 = vmul.f32 1.442695, %v925_v39 }
 0x3ea   : > { %v1063_v57 = vrot.slane %v1062_v52, 4  ;;  %v2557_v8 = vpop.permute.xlu1 %1166 }
 0x3eb   : > { %v1084_v62 = vsel %vm489_vm3, %v1082_v32, 0.0  ;;  %1788 = vpow2.f32 %v928_v47  ;;  %v1173_v6 = vmul.f32 %v2557_v8, %v2517_v58 }
 0x3ec   : > { %v1064_v9 = vadd.f32 %v1063_v57, %v1062_v52  ;;  %v1085_v63 = vadd.f32 %v1084_v62, %v1083_v50  ;;  %v1785_v50 = vpop.eup %1784  ;;  %v1171_v62 = vpop.permute.xlu0 %1170 }
 0x3ee   : > { %v1065_v0 = vrot.slane %v1064_v9, 2  ;;  %v1086_v2 = vrot.slane %v1085_v63, 4 }
 0x3ef   : > { %v2564_v7 = vpop.permute.xlu1 %1189  ;;  %v1787_v22 = vpop.eup %1786 }
 0x3f0   : > { %v1066_v12 = vadd.f32 %v1065_v0, %v1064_v9  ;;  %v1087_v14 = vadd.f32 %v1086_v2, %v1085_v63 }
 0x3f2   : > { %v1088_v15 = vrot.slane %v1087_v14, 2  ;;  %v1067_v3 = vrot.slane %v1066_v12, 1 }
 0x3f4   : > { %v966_v55 = vpop.permute.xlu1 %965  ;;  %v1089_v53 = vadd.f32 %v1088_v15, %v1087_v14  ;;  %v1068_v4 = vadd.f32 %v1067_v3, %v1066_v12 }
 0x3f5   : > { %v973_v19 = vmul.f32 %v2482_v20, %v966_v55  ;;  %v1106_v20 = vsel %vm489_vm3, %v1104_v25, 0.0  ;;  %v1175_v25 = vsel %vm489_vm3, %v1173_v6, 0.0 }
 0x3f6   : > { %v1090_v24 = vrot.slane %v1089_v53, 1 }
 0x3f7   : > { %v1095_v26 = vadd.f32 %v1093_v30, %v973_v19  ;;  %v1150_v30 = vmul.f32 %v1144_v43, %v2510_v54 }
 0x3f8   : > { %v1091_v29 = vadd.f32 %v1090_v24, %v1089_v53  ;;  %v1036_v24 = vpop.permute.xlu0 %1035 }
 0x3f9   : > { %v1105_v37 = vmul.f32 %v1102_v17, %v1095_v26  ;;  %v980_v36 = vpop.permute.xlu1 %979  ;;  %v1116_v38 = vmul.f32 %v1781_v10, %v1095_v26  ;;  %v1196_v26 = vmul.f32 %v2564_v7, %v2529_v1  ;;  %v1043_v39 = vmul.f32 %v2532_v5, %v1036_v24 }
 0x3fa   : > { %v1230_v42 = vsel %vm713_vm5, %v1068_v4, %v1091_v29  ;;  %v987_v16 = vmul.f32 %v2495_v31, %v980_v36  ;;  %v1129_v31 = vsel %vm489_vm3, %v2507_v46, 0.0  ;;  %v1152_v46 = vsel %vm489_vm3, %v1150_v30, 0.0 }
 0x3fb   : > { %v1107_v28 = vsel %vm489_vm3, %v1105_v37, 0.0  ;;  %v1198_v1 = vsel %vm489_vm3, %v1196_v26, 0.0 }
 0x3fc   : > { %v1108_v18 = vadd.f32 %v1107_v28, %v1106_v20  ;;  %v1118_v40 = vadd.f32 %v1116_v38, %v987_v16  ;;  %v1789_v38 = vpop.eup %1788 }
 0x3fe   : > { %v1109_v17 = vrot.slane %v1108_v18, 4  ;;  %v1128_v51 = vmul.f32 %v2546_v23, %v1118_v40  ;;  %v994_v60 = vpop.permute.xlu1 %993  ;;  %v1139_v52 = vmul.f32 %v1783_v44, %v1118_v40 }
 0x3ff   : > { %v1001_v27 = vmul.f32 %v2504_v34, %v994_v60 }
 0x400   : > { %v1110_v59 = vadd.f32 %v1109_v17, %v1108_v18  ;;  %v1130_v32 = vsel %vm489_vm3, %v1128_v51, 0.0 }
 0x401   : > { %v1131_v49 = vadd.f32 %v1130_v32, %v1129_v31  ;;  %v1141_v57 = vadd.f32 %v1139_v52, %v1001_v27 }
 0x402   : > { %v1111_v48 = vrot.slane %v1110_v59, 2 }
 0x403   : > { %v1132_v9 = vrot.slane %v1131_v49, 4  ;;  %v1151_v23 = vmul.f32 %v2550_v41, %v1141_v57  ;;  %v1008_v63 = vpop.permute.xlu1 %1007  ;;  %v1162_v0 = vmul.f32 %v1785_v50, %v1141_v57 }
 0x404   : > { %v1112_v34 = vadd.f32 %v1111_v48, %v1110_v59  ;;  %v1015_v2 = vmul.f32 %v2513_v56, %v1008_v63  ;;  %v1515_v56 = vmul.f32 -1.442695, %v2338_v21 }
 0x405   : > { %v1133_v54 = vadd.f32 %v1132_v9, %v1131_v49  ;;  %v1153_v11 = vsel %vm489_vm3, %v1151_v23, 0.0 }
 0x406   : > { %v1113_v12 = vrot.slane %v1112_v34, 1  ;;  %v1154_v14 = vadd.f32 %v1153_v11, %v1152_v46  ;;  %v1164_v15 = vadd.f32 %v1162_v0, %v1015_v2  ;;  %1790 = vpow2.f32 %v1515_v56 }
 0x407   : > { %v1134_v3 = vrot.slane %v1133_v54, 2 }
 0x408   : > { %v1114_v41 = vadd.f32 %v1113_v12, %v1112_v34  ;;  %v1155_v55 = vrot.slane %v1154_v14, 4  ;;  %v1174_v53 = vmul.f32 %v1171_v62, %v1164_v15  ;;  %v1022_v35 = vpop.permute.xlu1 %1021  ;;  %v1185_v19 = vmul.f32 %v1787_v22, %v1164_v15 }
 0x409   : > { %v1135_v58 = vadd.f32 %v1134_v3, %v1133_v54  ;;  %v1029_v8 = vmul.f32 %v2520_v61, %v1022_v35 }
 0x40a   : > { %v1232_v10 = vsel %vm1231_vm10, %v1230_v42, %v1114_v41  ;;  %v1156_v4 = vadd.f32 %v1155_v55, %v1154_v14  ;;  %v1176_v29 = vsel %vm489_vm3, %v1174_v53, 0.0  ;;  %v1213_v42 = vpop.permute.xlu0 %1212  ;;  %v1514_v55 = vld [vmem:[%s2719_s27] ss:$0 sm:$0xff] }
 0x40b   : > { %v1136_v33 = vrot.slane %v1135_v58, 1  ;;  %v1177_v37 = vadd.f32 %v1176_v29, %v1175_v25  ;;  %v1187_v36 = vadd.f32 %v1185_v19, %v1029_v8  ;;  %v1219_v51 = vmul.f32 %v1213_v42, %v2538_v13 }
 0x40c   : > { %v1157_v16 = vrot.slane %v1156_v4, 2  ;;  %v1194_v20 = vpop.permute.xlu1 %1193  ;;  %v1254_v35 = vmul.f32 %v1514_v55, %v2355_v45 }
 0x40d   : > { %v1137_v28 = vadd.f32 %v1136_v33, %v1135_v58  ;;  %v1178_v18 = vrot.slane %v1177_v37, 4  ;;  %v1197_v40 = vmul.f32 %v1194_v20, %v1187_v36  ;;  %v1208_v61 = vmul.f32 %v1789_v38, %v1187_v36 }
 0x40e   : > { %v1158_v7 = vadd.f32 %v1157_v16, %v1156_v4  ;;  %v1221_v50 = vsel %vm489_vm3, %v1219_v51, 0.0 }
 0x40f   : > { %v1234_v44 = vsel %vm1233_vm11, %v1232_v10, %v1137_v28  ;;  %v1179_v43 = vadd.f32 %v1178_v18, %v1177_v37  ;;  %v1199_v47 = vsel %vm489_vm3, %v1197_v40, 0.0  ;;  %v1210_v17 = vadd.f32 %v1208_v61, %v1043_v39 }
 0x410   : > { %v1159_v5 = vrot.slane %v1158_v7, 1  ;;  %v1200_v60 = vadd.f32 %v1199_v47, %v1198_v1  ;;  %v1791_v0 = vpop.eup %1790 }
 0x411   : > { %v1180_v52 = vrot.slane %v1179_v43, 2  ;;  %v1217_v27 = vpop.permute.xlu1 %1216  ;;  %1245 = vst.msk [vmem:[#allocation2 + $0x8] sm:$0xff] %vm489_vm3, %v1210_v17  ;;  %v1259_v54 = vadd.f32 1.0, %v1791_v0 }
 0x412   : > { %v1160_v31 = vadd.f32 %v1159_v5, %v1158_v7  ;;  %v1201_v59 = vrot.slane %v1200_v60, 4  ;;  %v1220_v32 = vmul.f32 %v1217_v27, %v1210_v17 }
 0x413   : > { %v1181_v30 = vadd.f32 %v1180_v52, %v1179_v43  ;;  %1792 = vrcp.f32 %v1259_v54 }
 0x414   : > { %v1236_v49 = vsel %vm1235_vm12, %v1234_v44, %v1160_v31  ;;  %v1202_v57 = vadd.f32 %v1201_v59, %v1200_v60  ;;  %v1222_v48 = vsel %vm489_vm3, %v1220_v32, 0.0 }
 0x415   : > { %v1182_v62 = vrot.slane %v1181_v30, 1  ;;  %v1223_v9 = vadd.f32 %v1222_v48, %v1221_v50 }
 0x416   : > { %v1203_v13 = vrot.slane %v1202_v57, 2 }
 0x417   : > { %v1183_v23 = vadd.f32 %v1182_v62, %v1181_v30  ;;  %v1224_v63 = vrot.slane %v1223_v9, 4 }
 0x418   : > { %v1204_v34 = vadd.f32 %v1203_v13, %v1202_v57 }
 0x419   : > { %v1238_v2 = vsel %vm1237_vm13, %v1236_v49, %v1183_v23  ;;  %v1225_v46 = vadd.f32 %v1224_v63, %v1223_v9 }
 0x41a   : > { %v1205_v6 = vrot.slane %v1204_v34, 1 }
 0x41b   : > { %v1226_v11 = vrot.slane %v1225_v46, 2 }
 0x41c   : > { %v1206_v12 = vadd.f32 %v1205_v6, %v1204_v34 }
 0x41d   : > { %v1227_v14 = vadd.f32 %v1226_v11, %v1225_v46  ;;  %v1793_v53 = vpop.eup %1792 }
 0x41e   : > { %v1240_v15 = vsel %vm1239_vm14, %v1238_v2, %v1206_v12  ;;  %v1262_v56 = vmul.f32 %v1793_v53, %v2338_v21 }
 0x41f   : > { %v1228_v22 = vrot.slane %v1227_v14, 1 }
 0x421   : > { %v1229_v3 = vadd.f32 %v1228_v22, %v1227_v14 }
 0x423   : > { %v1242_v41 = vsel %vm1241_vm15, %v1240_v15, %v1229_v3 }
 0x424   : > { %1243 = vst.msk [vmem:[#allocation8] sm:$0xff] %vm489_vm3, %v1242_v41 }
 0x42b   : > { %v1246_v19 = vld [vmem:[#allocation8] sm:$0xff] }
 0x42c   : > { %v1255_v24 = vadd.f32 %v1254_v35, %v1246_v19 }
 0x42e   : > { %v1263_v25 = vmul.f32 %v1262_v56, %v1255_v24 }
 0x430   : > { %v1264_v58 = vpack.c.bf16 %v1263_v25, %v1263_v25 }
 0x432   : > { %1565 = vmatmul.mubr.msk.bf16.vlgmr.msra.gmra.mrb[4].mxu0 %vm489_vm3, %v1264_v58 }
 0x505   : > { %v1334_v21 = vpop.f32.mrb[4].mxu0 }
 0x506   : > { %1340 = vst [vmem:[%s2323_s23] sm:$0xff] %v1334_v21  ;;  %v1566_v45 = vpop.f32.mrb[5].mxu0 }
 0x507   : > { %v1337_v8 = vpop.f32.mrb[6].mxu0 }
 0x508   : > { %1921 = shalt.err (!%p1918_p12)
}
 0x509   : > { %s1922_s5 = scalar_lea.hbm %s2616_s4, 128  ;;  %s1926_s30 = scalar_lea.hbm %s2720_s18, 512 }
 0x50a   : > { %p1923_p11 = scmp.ne.s32.totalorder %s2616_s4, %s1922_s5  ;;  %p1927_p5 = scmp.lt.u32.totalorder %s2616_s4, %s2720_s18 }
 0x50b   : > { %p1928_p2 = scmp.lt.u32.totalorder %s1926_s30, %s1922_s5  ;;  %p1930_p4 = scmp.lt.u32.totalorder %s1922_s5, %s2616_s4 }
 0x50c   : > { %p1924_p1 = pnand %p1923_p11, %p2244_p6 }
 0x50d   : > { %p1929_p0 = por %p1928_p2, %p1927_p5 }
 0x50e   : > { %p1925_p9 = pneg %p1924_p1 }
 0x50f   : > { %p1931_p10 = por %p1930_p4, %p1929_p0 }
 0x511   : > { %p1932_p8 = pnand %p1931_p10, %p1925_p9 }
 0x513   : > { %1935 = shalt.err (!%p1932_p8)
}
 0x514   : > { %1582 = dma.vmem_to_hbm [thread:$0]  (%p2244_p6), %s2618_s20, 128, %s2616_s4, %s1342_s22   ;;  %v1567_v26 = vpop.f32.mrb[7].mxu0 }
 0x515 PF: > { %s2721_s25 = sld [smem:[#allocation22_spill]]  ;;  %s2722_s17 = sld [smem:[#allocation24_spill]] }
 0x516   : > { %p1609_p13 = scmp.ge.s32.totalorder %s2014_s16, 2 }
 0x51b   : > { %s1369_s28 = sand.u32 1, %s2721_s25   ;;  %p2723_p3 = scmp.ne.s32.totalorder %s2722_s17, 0 }
 0x51c   : > { %s1370_s24 = scalar_lea.sflag [#allocation11], %s1369_s28 }
 0x51d   : > { %p1599_p7 = pnand %p1609_p13, %p2723_p3 }
 0x51f   : > { %1981 = dma.done.wait (!%p1599_p7), %s1370_s24, 128  }
 0x520   : > { %1983 = vsyncadd (!%p1599_p7), %s1370_s24, 4294967168  ;;  %s27_s16 = sadd.s32 1, %s2014_s16   ;;  %s2724_s26 = smov %s2737_s13 }
 0x521   : > { %p24_p12 = scmp.ge.s32.totalorder %s27_s16, 6   ;;  %s2725_s30 = smov %s1990_s10 }
 0x522   : > { %s2726_s10 = smov %s1994_s11  ;;  %s2727_s11 = smov %s2261_s1 }
 0x523   : > { %s2728_s12 = smov %s2006_s14  ;;  %s2729_s13 = smov %s2010_s15 }
 0x524   : > { %s2730_s14 = smov %s2733_s7  ;;  %s2731_s15 = smov %s2724_s26 }
 0x525   :  { %26 = sbr.rel (!%p24_p12) target bundleno = 17 (0x11), region = 117 }
 0x52c   :  { %1375 = vsyncpa [#allocation10], 1 }
 0x52d   :  { %1377 = vsyncpa [#allocation10 + $0x1], 1 }
 0x52e   :  { %1378 = vsyncpa [#allocation13], 1 }
 0x52f   :  { %1379 = vsyncpa [#allocation16], 1 }
 0x530   :  { %1380 = vsyncpa [#allocation11], 1 }
 0x531   :  { %1382 = vsyncpa [#allocation11 + $0x1], 1 }

</bundles_post_ra>
